<compile_context>
chip_gen: v6e
topology: v6e:2x2x1
jax: 0.10.0
libtpu: 0.0.40
codegen_flags: <defaults>
</compile_context>

<pallas_src>
import functools
import math

import jax
import jax.numpy as jnp
from jax import lax
from jax.experimental import pallas as pl
from jax.experimental.pallas import tpu as pltpu

# ----------------------------- configuration --------------------------------
CFG = dict(
    B=2,
    L_target=8,
    L_cond=12,
    P=1,
    K=5,            # keypoints
    D=3,            # dims
    latent_dim=32,
    ff_size=64,     # sequence encoder feed-forward
    num_layers=2,   # sequence encoder layers (module default 8; small here)
    num_heads=4,
    dis_layers=2,   # DisfluentContextEncoder: fixed 2 layers
    dis_heads=4,    # DisfluentContextEncoder: fixed 4 heads
    max_len=5000,   # PositionalEncoding max_len
)
CFG["input_feats"] = CFG["K"] * CFG["D"]
CFG["dis_ff"] = CFG["latent_dim"] * 4

OUT_PAD = 128  # lane-dense padded width of the pose-projection output

STACK_KEYS = ("qkv_w", "qkv_b", "ow", "ob",
              "l1w", "l1b", "l2w", "l2b",
              "n1w", "n1b", "n2w", "n2b")


# --------------------------- in-kernel helpers -------------------------------
def _mm(a, b):
    """MXU matmul with bf16 inputs and f32 accumulation (single MXU pass)."""
    return jnp.dot(a.astype(jnp.bfloat16), b.astype(jnp.bfloat16),
                   preferred_element_type=jnp.float32)


def _layer_norm(x, w, b, eps=1e-5):
    mu = jnp.mean(x, axis=-1, keepdims=True)
    xc = x - mu
    var = jnp.mean(xc * xc, axis=-1, keepdims=True)
    return xc * lax.rsqrt(var + eps) * w + b


def _softmax_rows(s):
    s = s - jnp.max(s, axis=-1, keepdims=True)
    p = jnp.exp(s)
    return p * pl.reciprocal(jnp.sum(p, axis=-1, keepdims=True), approx=True)


def _encoder_layer(x, stack, layer, n_heads, mask, attn_scr):
    """One nn.TransformerEncoderLayer (post-norm, eval) on batch-row-stacked x.

    x: (R, d) with R = B * T rows; `mask` is an additive block-diagonal mask
    that keeps attention within each batch item's row block.
    """
    R, d = x.shape
    dh = d // n_heads
    scale = 1.0 / math.sqrt(dh)

    # ONE packed QKV projection for all heads and both batch items.
    qkv = _mm(x, stack["qkv_w"][layer]) + stack["qkv_b"][layer]          # (R, 3d)

    # Per-head scores / softmax / PV; head outputs land at their lane offset in
    # a VMEM scratch so the out_proj below is a single matmul.
    for h in range(n_heads):
        q = qkv[:, h * dh:(h + 1) * dh]
        k = qkv[:, d + h * dh:d + (h + 1) * dh]
        v = qkv[:, 2 * d + h * dh:2 * d + (h + 1) * dh]
        s = lax.dot_general(q.astype(jnp.bfloat16), k.astype(jnp.bfloat16),
                            (((1,), (1,)), ((), ())),
                            preferred_element_type=jnp.float32) * scale + mask
        attn_scr[0:R, h * dh:(h + 1) * dh] = _mm(_softmax_rows(s), v)

    attn = _mm(attn_scr[0:R, :], stack["ow"][layer]) + stack["ob"][layer]
    x = _layer_norm(x + attn, stack["n1w"][layer], stack["n1b"][layer])

    # Feed-forward: Linear -> GELU -> Linear.
    # TODO(synk): PyTorch activation='gelu' is exact erf-GELU; tanh approx used
    #             here (EUP slot) -- ~1e-3 deviation.
    h1 = _mm(x, stack["l1w"][layer]) + stack["l1b"][layer]
    h1 = jax.nn.gelu(h1, approximate=True)
    ff = _mm(h1, stack["l2w"][layer]) + stack["l2b"][layer]
    return _layer_norm(x + ff, stack["n2w"][layer], stack["n2b"][layer])


# ------------------------------ fused kernel ---------------------------------
def fused_forward_kernel(*refs, dis_heads, seq_heads):
    n = len(STACK_KEYS)
    (fluent_ref, disf_ref, t_pe_ref, seq_pe_ref, dis_mask_ref, seq_mask_ref,
     fl_w_ref, fl_b_ref, de_w_ref, de_b_ref,
     t1_w_ref, t1_b_ref, t2_w_ref, t2_b_ref,
     pose_w_ref, pose_b_ref) = refs[:16]
    dis_stack = dict(zip(STACK_KEYS, refs[16:16 + n]))
    seq_stack = dict(zip(STACK_KEYS, refs[16 + n:16 + 2 * n]))
    out_ref, seq_scr, attn_scr = refs[16 + 2 * n:]

    B, d = t_pe_ref.shape
    T_total = seq_pe_ref.shape[0]
    L_target = T_total - 2
    L_cond = disf_ref.shape[0] // B
    dis_layers = dis_stack["qkv_w"].shape[0]
    seq_layers = seq_stack["qkv_w"].shape[0]

    seq_pe = seq_pe_ref[...]
    dis_mask = dis_mask_ref[...]
    seq_mask = seq_mask_ref[...]

    # ---- disfluent context encoder (batch row-stacked): embed -> 2 layers
    x_dis = _mm(disf_ref[...], de_w_ref[...]) + de_b_ref[...]         # (B*Lc, d)
    for l in range(dis_layers):
        x_dis = _encoder_layer(x_dis, dis_stack, l, dis_heads, dis_mask, attn_scr)

    # ---- timestep embedding: PE row -> Linear -> SiLU -> Linear    (B, d)
    te = _mm(t_pe_ref[...], t1_w_ref[...]) + t1_b_ref[...]
    te = te * jax.nn.sigmoid(te)
    te = _mm(te, t2_w_ref[...]) + t2_b_ref[...]

    # ---- fluent embedding (batch row-stacked)                      (B*Lt, d)
    fl_emb = _mm(fluent_ref[...], fl_w_ref[...]) + fl_b_ref[...]

    # ---- assemble [t_emb, context, fluent] + positional enc via direct writes
    for b in range(B):
        base = b * T_total
        ctx = jnp.mean(x_dis[b * L_cond:(b + 1) * L_cond, :],
                       axis=0, keepdims=True)                         # (1, d)
        seq_scr[base:base + 1, :] = te[b:b + 1, :] + seq_pe[0:1, :]
        seq_scr[base + 1:base + 2, :] = ctx + seq_pe[1:2, :]
        seq_scr[base + 2:base + T_total, :] = (
            fl_emb[b * L_target:(b + 1) * L_target, :] + seq_pe[2:T_total, :])

    # ---- main sequence encoder (batch row-stacked)
    seq = seq_scr[...]
    for l in range(seq_layers):
        seq = _encoder_layer(seq, seq_stack, l, seq_heads, seq_mask, attn_scr)

    # ---- pose projection, padded to OUT_PAD lanes (lane-dense store)
    out_ref[...] = _mm(seq, pose_w_ref[...]) + pose_b_ref[...]


# ----------------------------- parameter init --------------------------------
def make_positional_encoding(max_len, d_model):
    position = jnp.arange(max_len, dtype=jnp.float32)[:, None]
    div_term = jnp.exp(
        jnp.arange(0, d_model, 2, dtype=jnp.float32) * (-math.log(10000.0) / d_model))
    pe = jnp.zeros((max_len, d_model), dtype=jnp.float32)
    pe = pe.at[:, 0::2].set(jnp.sin(position * div_term))
    pe = pe.at[:, 1::2].set(jnp.cos(position * div_term))
    return pe  # (max_len, d_model)


def init_linear(key, in_dim, out_dim):
    k1, k2 = jax.random.split(key)
    w = jax.random.normal(k1, (in_dim, out_dim), jnp.float32) * 0.02
    b = jax.random.normal(k2, (out_dim,), jnp.float32) * 0.02
    return w, b


def init_encoder_stack(key, d, ff, n_layers):
    """Per-layer transformer weights; QKV kept packed (PyTorch in_proj^T)."""
    acc = {k: [] for k in STACK_KEYS}
    for lk in jax.random.split(key, n_layers):
        ks = jax.random.split(lk, 4)
        in_w, in_b = init_linear(ks[0], d, 3 * d)   # packed [q|k|v]
        out_w, out_b = init_linear(ks[1], d, d)
        w1, b1 = init_linear(ks[2], d, ff)
        w2, b2 = init_linear(ks[3], ff, d)
        acc["qkv_w"].append(in_w.astype(jnp.bfloat16))
        acc["qkv_b"].append(in_b.reshape(1, 3 * d))
        acc["ow"].append(out_w.astype(jnp.bfloat16))
        acc["ob"].append(out_b.reshape(1, d))
        acc["l1w"].append(w1.astype(jnp.bfloat16))
        acc["l1b"].append(b1.reshape(1, ff))
        acc["l2w"].append(w2.astype(jnp.bfloat16))
        acc["l2b"].append(b2.reshape(1, d))
        acc["n1w"].append(jnp.ones((1, d), jnp.float32))
        acc["n1b"].append(jnp.zeros((1, d), jnp.float32))
        acc["n2w"].append(jnp.ones((1, d), jnp.float32))
        acc["n2b"].append(jnp.zeros((1, d), jnp.float32))
    return {k: jnp.stack(v, axis=0) for k, v in acc.items()}


def init_params(key):
    d = CFG["latent_dim"]
    feats = CFG["input_feats"]
    keys = jax.random.split(key, 7)
    fl_w, fl_b = init_linear(keys[0], feats, d)
    de_w, de_b = init_linear(keys[1], feats, d)
    t1_w, t1_b = init_linear(keys[2], d, d)
    t2_w, t2_b = init_linear(keys[3], d, d)
    pw, pb = init_linear(keys[4], d, feats)
    pose_w = jnp.zeros((d, OUT_PAD), jnp.float32).at[:, :feats].set(pw)
    pose_b = jnp.zeros((1, OUT_PAD), jnp.float32).at[:, :feats].set(pb.reshape(1, feats))
    # bf16 weights at the matmul boundaries (f32 accumulate in-kernel); biases,
    # layer-norm params and the PE table stay f32.
    return {
        "fl_w": fl_w.astype(jnp.bfloat16), "fl_b": fl_b.reshape(1, d),
        "de_w": de_w.astype(jnp.bfloat16), "de_b": de_b.reshape(1, d),
        "t1_w": t1_w.astype(jnp.bfloat16), "t1_b": t1_b.reshape(1, d),
        "t2_w": t2_w.astype(jnp.bfloat16), "t2_b": t2_b.reshape(1, d),
        "pose_w": pose_w.astype(jnp.bfloat16), "pose_b": pose_b,
        "dis_stack": init_encoder_stack(keys[5], d, CFG["dis_ff"], CFG["dis_layers"]),
        "seq_stack": init_encoder_stack(keys[6], d, CFG["ff_size"], CFG["num_layers"]),
        "pe": make_positional_encoding(CFG["max_len"], d),
    }


# ----------------------------- model forward ---------------------------------
def _block_diag_mask(num_blocks, block_rows):
    """Additive mask: 0 inside each batch item's row block, -1e30 elsewhere."""
    ids = jnp.arange(num_blocks * block_rows, dtype=jnp.int32) // block_rows
    return jnp.where(ids[:, None] == ids[None, :], 0.0, -1e30).astype(jnp.float32)


def sign_language_pose_diffusion_forward(params, fluent_clip, disfluent_seq, t):
    B, L_target, P, K, D = fluent_clip.shape
    feats = K * D
    L_cond = disfluent_seq.shape[1]
    T_total = L_target + 2
    d = CFG["latent_dim"]

    # Squeeze the people axis, flatten (K, D), stack the batch along rows.
    fluent2d = fluent_clip[:, :, 0].reshape(B * L_target, feats)
    disf2d = disfluent_seq[:, :, 0].reshape(B * L_cond, feats)

    # Only the PE rows the kernel needs (not the 5000x32 table).
    pe = params["pe"]
    t_pe = pe[t]                  # (B, d)      TimestepEmbedder lookup
    seq_pe = pe[:T_total]         # (T_total, d) sequence positional encoding

    # Block-diagonal attention masks keep attention within each batch item
    # while the matmuls run once on the row-stacked tensors.
    dis_mask = _block_diag_mask(B, L_cond)
    seq_mask = _block_diag_mask(B, T_total)

    inputs = [fluent2d, disf2d, t_pe, seq_pe, dis_mask, seq_mask,
              params["fl_w"], params["fl_b"], params["de_w"], params["de_b"],
              params["t1_w"], params["t1_b"], params["t2_w"], params["t2_b"],
              params["pose_w"], params["pose_b"]]
    inputs += [params["dis_stack"][k] for k in STACK_KEYS]
    inputs += [params["seq_stack"][k] for k in STACK_KEYS]

    kernel = functools.partial(fused_forward_kernel,
                               dis_heads=CFG["dis_heads"],
                               seq_heads=CFG["num_heads"])

    out_pad = pl.pallas_call(
        kernel,
        out_shape=jax.ShapeDtypeStruct((B * T_total, OUT_PAD), jnp.float32),
        in_specs=[pl.BlockSpec(memory_space=pltpu.MemorySpace.VMEM)] * len(inputs),
        out_specs=pl.BlockSpec(memory_space=pltpu.MemorySpace.VMEM),
        scratch_shapes=[
            pltpu.VMEM((B * T_total, d), jnp.float32),                      # seq assembly
            pltpu.VMEM((max(B * L_cond, B * T_total), d), jnp.float32),     # attn heads
        ],
    )(*inputs)

    # Drop the 2 prefix rows (t_emb / context slots) and the lane padding.
    out = out_pad.reshape(B, T_total, OUT_PAD)[:, 2:, :feats]
    return out.reshape(B, L_target, K, D)


# TODO(synk): interface()'s random CFG condition-masking (torch.rand dropout of
# the condition) is training-time stochastic glue and is not part of forward().


# --------------------------------- main ---------------------------------------
if __name__ == "__main__":
    key = jax.random.PRNGKey(0)
    k_params, k_fluent, k_disfluent, k_t = jax.random.split(key, 4)

    params = init_params(k_params)

    B, Lt, Lc, P, K, D = (CFG["B"], CFG["L_target"], CFG["L_cond"],
                          CFG["P"], CFG["K"], CFG["D"])
    fluent_clip = jax.random.normal(k_fluent, (B, Lt, P, K, D), jnp.float32)
    disfluent_seq = jax.random.normal(k_disfluent, (B, Lc, P, K, D), jnp.float32)
    t = jax.random.randint(k_t, (B,), 0, 1000, dtype=jnp.int32)

    fwd = jax.jit(sign_language_pose_diffusion_forward)
    out = fwd(params, fluent_clip, disfluent_seq, t)
    jax.block_until_ready(out)

    assert out.shape == (B, Lt, K, D), out.shape
    assert out.dtype == jnp.float32
    assert bool(jnp.all(jnp.isfinite(out)))
    print("KERNEL_OK")
</pallas_src>

<mosaic_0001>
module attributes {stable_mosaic.version = 11 : i64} {
  func.func @fused_forward_kernel(%arg0: memref<16x15xf32, #tpu.memory_space<vmem>>, %arg1: memref<24x15xf32, #tpu.memory_space<vmem>>, %arg2: memref<2x32xf32, #tpu.memory_space<vmem>>, %arg3: memref<10x32xf32, #tpu.memory_space<vmem>>, %arg4: memref<24x24xf32, #tpu.memory_space<vmem>>, %arg5: memref<20x20xf32, #tpu.memory_space<vmem>>, %arg6: memref<15x32xbf16, #tpu.memory_space<vmem>>, %arg7: memref<1x32xf32, #tpu.memory_space<vmem>>, %arg8: memref<15x32xbf16, #tpu.memory_space<vmem>>, %arg9: memref<1x32xf32, #tpu.memory_space<vmem>>, %arg10: memref<32x32xbf16, #tpu.memory_space<vmem>>, %arg11: memref<1x32xf32, #tpu.memory_space<vmem>>, %arg12: memref<32x32xbf16, #tpu.memory_space<vmem>>, %arg13: memref<1x32xf32, #tpu.memory_space<vmem>>, %arg14: memref<32x128xbf16, #tpu.memory_space<vmem>>, %arg15: memref<1x128xf32, #tpu.memory_space<vmem>>, %arg16: memref<2x32x96xbf16, #tpu.memory_space<vmem>>, %arg17: memref<2x1x96xf32, #tpu.memory_space<vmem>>, %arg18: memref<2x32x32xbf16, #tpu.memory_space<vmem>>, %arg19: memref<2x1x32xf32, #tpu.memory_space<vmem>>, %arg20: memref<2x32x128xbf16, #tpu.memory_space<vmem>>, %arg21: memref<2x1x128xf32, #tpu.memory_space<vmem>>, %arg22: memref<2x128x32xbf16, #tpu.memory_space<vmem>>, %arg23: memref<2x1x32xf32, #tpu.memory_space<vmem>>, %arg24: memref<2x1x32xf32, #tpu.memory_space<vmem>>, %arg25: memref<2x1x32xf32, #tpu.memory_space<vmem>>, %arg26: memref<2x1x32xf32, #tpu.memory_space<vmem>>, %arg27: memref<2x1x32xf32, #tpu.memory_space<vmem>>, %arg28: memref<2x32x96xbf16, #tpu.memory_space<vmem>>, %arg29: memref<2x1x96xf32, #tpu.memory_space<vmem>>, %arg30: memref<2x32x32xbf16, #tpu.memory_space<vmem>>, %arg31: memref<2x1x32xf32, #tpu.memory_space<vmem>>, %arg32: memref<2x32x64xbf16, #tpu.memory_space<vmem>>, %arg33: memref<2x1x64xf32, #tpu.memory_space<vmem>>, %arg34: memref<2x64x32xbf16, #tpu.memory_space<vmem>>, %arg35: memref<2x1x32xf32, #tpu.memory_space<vmem>>, %arg36: memref<2x1x32xf32, #tpu.memory_space<vmem>>, %arg37: memref<2x1x32xf32, #tpu.memory_space<vmem>>, %arg38: memref<2x1x32xf32, #tpu.memory_space<vmem>>, %arg39: memref<2x1x32xf32, #tpu.memory_space<vmem>>, %arg40: memref<20x128xf32, #tpu.memory_space<vmem>>, %arg41: memref<20x32xf32, #tpu.memory_space<vmem>>, %arg42: memref<24x32xf32, #tpu.memory_space<vmem>>) attributes {dimension_semantics = [], scalar_prefetch = 0 : i64, scratch_operands = 2 : i64, tpu.core_type = #tpu.core_type<tc>} {
    %c0 = arith.constant 0 : index
    %c0_0 = arith.constant 0 : index
    %0 = vector.load %arg3[%c0, %c0_0] : memref<10x32xf32, #tpu.memory_space<vmem>>, vector<10x32xf32>
    %c0_1 = arith.constant 0 : index
    %c0_2 = arith.constant 0 : index
    %1 = vector.load %arg4[%c0_1, %c0_2] : memref<24x24xf32, #tpu.memory_space<vmem>>, vector<24x24xf32>
    %c0_3 = arith.constant 0 : index
    %c0_4 = arith.constant 0 : index
    %2 = vector.load %arg5[%c0_3, %c0_4] : memref<20x20xf32, #tpu.memory_space<vmem>>, vector<20x20xf32>
    %c0_5 = arith.constant 0 : index
    %c0_6 = arith.constant 0 : index
    %3 = vector.load %arg1[%c0_5, %c0_6] : memref<24x15xf32, #tpu.memory_space<vmem>>, vector<24x15xf32>
    %c0_7 = arith.constant 0 : index
    %c0_8 = arith.constant 0 : index
    %4 = vector.load %arg8[%c0_7, %c0_8] : memref<15x32xbf16, #tpu.memory_space<vmem>>, vector<15x32xbf16>
    %5 = arith.truncf %3 : vector<24x15xf32> to vector<24x15xbf16>
    %cst = arith.constant dense<0.000000e+00> : vector<24x32xf32>
    %6 = tpu.matmul %5, %4, %cst {dimension_numbers = #tpu.dot_dimension_numbers<[1], [0], [0], [1], [0, 0, 1, 1], [], []>} : vector<24x15xbf16>, vector<15x32xbf16>, vector<24x32xf32> -> vector<24x32xf32>
    %c0_9 = arith.constant 0 : index
    %c0_10 = arith.constant 0 : index
    %7 = vector.load %arg9[%c0_9, %c0_10] : memref<1x32xf32, #tpu.memory_space<vmem>>, vector<1x32xf32>
    %8 = vector.broadcast %7 : vector<1x32xf32> to vector<24x32xf32>
    %9 = arith.addf %6, %8 : vector<24x32xf32>
    %c0_11 = arith.constant 0 : index
    %c0_12 = arith.constant 0 : index
    %c0_13 = arith.constant 0 : index
    %10 = vector.load %arg16[%c0_11, %c0_12, %c0_13] : memref<2x32x96xbf16, #tpu.memory_space<vmem>>, vector<1x32x96xbf16>
    %11 = vector.shape_cast %10 : vector<1x32x96xbf16> to vector<32x96xbf16>
    %12 = arith.truncf %9 : vector<24x32xf32> to vector<24x32xbf16>
    %cst_14 = arith.constant dense<0.000000e+00> : vector<24x96xf32>
    %13 = tpu.matmul %12, %11, %cst_14 {dimension_numbers = #tpu.dot_dimension_numbers<[1], [0], [0], [1], [0, 0, 1, 1], [], []>} : vector<24x32xbf16>, vector<32x96xbf16>, vector<24x96xf32> -> vector<24x96xf32>
    %c0_15 = arith.constant 0 : index
    %c0_16 = arith.constant 0 : index
    %c0_17 = arith.constant 0 : index
    %14 = vector.load %arg17[%c0_15, %c0_16, %c0_17] : memref<2x1x96xf32, #tpu.memory_space<vmem>>, vector<1x1x96xf32>
    %15 = vector.shape_cast %14 : vector<1x1x96xf32> to vector<1x96xf32>
    %16 = vector.broadcast %15 : vector<1x96xf32> to vector<24x96xf32>
    %17 = arith.addf %13, %16 : vector<24x96xf32>
    %18 = vector.extract_strided_slice %17 {offsets = [0, 0], sizes = [24, 8], strides = [1, 1]} : vector<24x96xf32> to vector<24x8xf32>
    %19 = vector.extract_strided_slice %17 {offsets = [0, 32], sizes = [24, 8], strides = [1, 1]} : vector<24x96xf32> to vector<24x8xf32>
    %20 = vector.extract_strided_slice %17 {offsets = [0, 64], sizes = [24, 8], strides = [1, 1]} : vector<24x96xf32> to vector<24x8xf32>
    %21 = arith.truncf %18 : vector<24x8xf32> to vector<24x8xbf16>
    %22 = arith.truncf %19 : vector<24x8xf32> to vector<24x8xbf16>
    %cst_18 = arith.constant dense<0.000000e+00> : vector<24x24xf32>
    %23 = tpu.matmul %21, %22, %cst_18 {dimension_numbers = #tpu.dot_dimension_numbers<[1], [1], [0], [0], [0, 0, 1, 0], [], []>} : vector<24x8xbf16>, vector<24x8xbf16>, vector<24x24xf32> -> vector<24x24xf32>
    %cst_19 = arith.constant 0.353553385 : f32
    %24 = vector.broadcast %cst_19 : f32 to vector<24x24xf32>
    %25 = arith.mulf %23, %24 : vector<24x24xf32>
    %26 = arith.addf %25, %1 : vector<24x24xf32>
    %cst_20 = arith.constant dense<0xFF800000> : vector<24xf32>
    %27 = vector.multi_reduction <maximumf>, %26, %cst_20 [1] : vector<24x24xf32> to vector<24xf32>
    %28 = vector.shape_cast %27 : vector<24xf32> to vector<24x1xf32>
    %29 = vector.broadcast %28 : vector<24x1xf32> to vector<24x24xf32>
    %30 = arith.subf %26, %29 : vector<24x24xf32>
    %31 = math.exp %30 : vector<24x24xf32>
    %cst_21 = arith.constant dense<0.000000e+00> : vector<24xf32>
    %32 = vector.multi_reduction <add>, %31, %cst_21 [1] : vector<24x24xf32> to vector<24xf32>
    %33 = vector.shape_cast %32 : vector<24xf32> to vector<24x1xf32>
    %34 = tpu.reciprocal %33 {approx = true} : vector<24x1xf32> -> vector<24x1xf32>
    %35 = vector.broadcast %34 : vector<24x1xf32> to vector<24x24xf32>
    %36 = arith.mulf %31, %35 : vector<24x24xf32>
    %37 = arith.truncf %36 : vector<24x24xf32> to vector<24x24xbf16>
    %38 = arith.truncf %20 : vector<24x8xf32> to vector<24x8xbf16>
    %cst_22 = arith.constant dense<0.000000e+00> : vector<24x8xf32>
    %39 = tpu.matmul %37, %38, %cst_22 {dimension_numbers = #tpu.dot_dimension_numbers<[1], [0], [0], [1], [0, 0, 1, 1], [], []>} : vector<24x24xbf16>, vector<24x8xbf16>, vector<24x8xf32> -> vector<24x8xf32>
    %c0_23 = arith.constant 0 : index
    %c0_24 = arith.constant 0 : index
    %40 = vector.load %arg42[%c0_23, %c0_24] : memref<24x32xf32, #tpu.memory_space<vmem>>, vector<24x8xf32>
    tpu.vector_store %arg42[%c0_23, %c0_24], %39 {strides = array<i32>} : memref<24x32xf32, #tpu.memory_space<vmem>>, vector<24x8xf32>,
    %41 = vector.extract_strided_slice %17 {offsets = [0, 8], sizes = [24, 8], strides = [1, 1]} : vector<24x96xf32> to vector<24x8xf32>
    %42 = vector.extract_strided_slice %17 {offsets = [0, 40], sizes = [24, 8], strides = [1, 1]} : vector<24x96xf32> to vector<24x8xf32>
    %43 = vector.extract_strided_slice %17 {offsets = [0, 72], sizes = [24, 8], strides = [1, 1]} : vector<24x96xf32> to vector<24x8xf32>
    %44 = arith.truncf %41 : vector<24x8xf32> to vector<24x8xbf16>
    %45 = arith.truncf %42 : vector<24x8xf32> to vector<24x8xbf16>
    %cst_25 = arith.constant dense<0.000000e+00> : vector<24x24xf32>
    %46 = tpu.matmul %44, %45, %cst_25 {dimension_numbers = #tpu.dot_dimension_numbers<[1], [1], [0], [0], [0, 0, 1, 0], [], []>} : vector<24x8xbf16>, vector<24x8xbf16>, vector<24x24xf32> -> vector<24x24xf32>
    %cst_26 = arith.constant 0.353553385 : f32
    %47 = vector.broadcast %cst_26 : f32 to vector<24x24xf32>
    %48 = arith.mulf %46, %47 : vector<24x24xf32>
    %49 = arith.addf %48, %1 : vector<24x24xf32>
    %cst_27 = arith.constant dense<0xFF800000> : vector<24xf32>
    %50 = vector.multi_reduction <maximumf>, %49, %cst_27 [1] : vector<24x24xf32> to vector<24xf32>
    %51 = vector.shape_cast %50 : vector<24xf32> to vector<24x1xf32>
    %52 = vector.broadcast %51 : vector<24x1xf32> to vector<24x24xf32>
    %53 = arith.subf %49, %52 : vector<24x24xf32>
    %54 = math.exp %53 : vector<24x24xf32>
    %cst_28 = arith.constant dense<0.000000e+00> : vector<24xf32>
    %55 = vector.multi_reduction <add>, %54, %cst_28 [1] : vector<24x24xf32> to vector<24xf32>
    %56 = vector.shape_cast %55 : vector<24xf32> to vector<24x1xf32>
    %57 = tpu.reciprocal %56 {approx = true} : vector<24x1xf32> -> vector<24x1xf32>
    %58 = vector.broadcast %57 : vector<24x1xf32> to vector<24x24xf32>
    %59 = arith.mulf %54, %58 : vector<24x24xf32>
    %60 = arith.truncf %59 : vector<24x24xf32> to vector<24x24xbf16>
    %61 = arith.truncf %43 : vector<24x8xf32> to vector<24x8xbf16>
    %cst_29 = arith.constant dense<0.000000e+00> : vector<24x8xf32>
    %62 = tpu.matmul %60, %61, %cst_29 {dimension_numbers = #tpu.dot_dimension_numbers<[1], [0], [0], [1], [0, 0, 1, 1], [], []>} : vector<24x24xbf16>, vector<24x8xbf16>, vector<24x8xf32> -> vector<24x8xf32>
    %c0_30 = arith.constant 0 : index
    %c8 = arith.constant 8 : index
    %63 = vector.load %arg42[%c0_30, %c8] : memref<24x32xf32, #tpu.memory_space<vmem>>, vector<24x8xf32>
    tpu.vector_store %arg42[%c0_30, %c8], %62 {strides = array<i32>} : memref<24x32xf32, #tpu.memory_space<vmem>>, vector<24x8xf32>,
    %64 = vector.extract_strided_slice %17 {offsets = [0, 16], sizes = [24, 8], strides = [1, 1]} : vector<24x96xf32> to vector<24x8xf32>
    %65 = vector.extract_strided_slice %17 {offsets = [0, 48], sizes = [24, 8], strides = [1, 1]} : vector<24x96xf32> to vector<24x8xf32>
    %66 = vector.extract_strided_slice %17 {offsets = [0, 80], sizes = [24, 8], strides = [1, 1]} : vector<24x96xf32> to vector<24x8xf32>
    %67 = arith.truncf %64 : vector<24x8xf32> to vector<24x8xbf16>
    %68 = arith.truncf %65 : vector<24x8xf32> to vector<24x8xbf16>
    %cst_31 = arith.constant dense<0.000000e+00> : vector<24x24xf32>
    %69 = tpu.matmul %67, %68, %cst_31 {dimension_numbers = #tpu.dot_dimension_numbers<[1], [1], [0], [0], [0, 0, 1, 0], [], []>} : vector<24x8xbf16>, vector<24x8xbf16>, vector<24x24xf32> -> vector<24x24xf32>
    %cst_32 = arith.constant 0.353553385 : f32
    %70 = vector.broadcast %cst_32 : f32 to vector<24x24xf32>
    %71 = arith.mulf %69, %70 : vector<24x24xf32>
    %72 = arith.addf %71, %1 : vector<24x24xf32>
    %cst_33 = arith.constant dense<0xFF800000> : vector<24xf32>
    %73 = vector.multi_reduction <maximumf>, %72, %cst_33 [1] : vector<24x24xf32> to vector<24xf32>
    %74 = vector.shape_cast %73 : vector<24xf32> to vector<24x1xf32>
    %75 = vector.broadcast %74 : vector<24x1xf32> to vector<24x24xf32>
    %76 = arith.subf %72, %75 : vector<24x24xf32>
    %77 = math.exp %76 : vector<24x24xf32>
    %cst_34 = arith.constant dense<0.000000e+00> : vector<24xf32>
    %78 = vector.multi_reduction <add>, %77, %cst_34 [1] : vector<24x24xf32> to vector<24xf32>
    %79 = vector.shape_cast %78 : vector<24xf32> to vector<24x1xf32>
    %80 = tpu.reciprocal %79 {approx = true} : vector<24x1xf32> -> vector<24x1xf32>
    %81 = vector.broadcast %80 : vector<24x1xf32> to vector<24x24xf32>
    %82 = arith.mulf %77, %81 : vector<24x24xf32>
    %83 = arith.truncf %82 : vector<24x24xf32> to vector<24x24xbf16>
    %84 = arith.truncf %66 : vector<24x8xf32> to vector<24x8xbf16>
    %cst_35 = arith.constant dense<0.000000e+00> : vector<24x8xf32>
    %85 = tpu.matmul %83, %84, %cst_35 {dimension_numbers = #tpu.dot_dimension_numbers<[1], [0], [0], [1], [0, 0, 1, 1], [], []>} : vector<24x24xbf16>, vector<24x8xbf16>, vector<24x8xf32> -> vector<24x8xf32>
    %c0_36 = arith.constant 0 : index
    %c16 = arith.constant 16 : index
    %86 = vector.load %arg42[%c0_36, %c16] : memref<24x32xf32, #tpu.memory_space<vmem>>, vector<24x8xf32>
    tpu.vector_store %arg42[%c0_36, %c16], %85 {strides = array<i32>} : memref<24x32xf32, #tpu.memory_space<vmem>>, vector<24x8xf32>,
    %87 = vector.extract_strided_slice %17 {offsets = [0, 24], sizes = [24, 8], strides = [1, 1]} : vector<24x96xf32> to vector<24x8xf32>
    %88 = vector.extract_strided_slice %17 {offsets = [0, 56], sizes = [24, 8], strides = [1, 1]} : vector<24x96xf32> to vector<24x8xf32>
    %89 = vector.extract_strided_slice %17 {offsets = [0, 88], sizes = [24, 8], strides = [1, 1]} : vector<24x96xf32> to vector<24x8xf32>
    %90 = arith.truncf %87 : vector<24x8xf32> to vector<24x8xbf16>
    %91 = arith.truncf %88 : vector<24x8xf32> to vector<24x8xbf16>
    %cst_37 = arith.constant dense<0.000000e+00> : vector<24x24xf32>
    %92 = tpu.matmul %90, %91, %cst_37 {dimension_numbers = #tpu.dot_dimension_numbers<[1], [1], [0], [0], [0, 0, 1, 0], [], []>} : vector<24x8xbf16>, vector<24x8xbf16>, vector<24x24xf32> -> vector<24x24xf32>
    %cst_38 = arith.constant 0.353553385 : f32
    %93 = vector.broadcast %cst_38 : f32 to vector<24x24xf32>
    %94 = arith.mulf %92, %93 : vector<24x24xf32>
    %95 = arith.addf %94, %1 : vector<24x24xf32>
    %cst_39 = arith.constant dense<0xFF800000> : vector<24xf32>
    %96 = vector.multi_reduction <maximumf>, %95, %cst_39 [1] : vector<24x24xf32> to vector<24xf32>
    %97 = vector.shape_cast %96 : vector<24xf32> to vector<24x1xf32>
    %98 = vector.broadcast %97 : vector<24x1xf32> to vector<24x24xf32>
    %99 = arith.subf %95, %98 : vector<24x24xf32>
    %100 = math.exp %99 : vector<24x24xf32>
    %cst_40 = arith.constant dense<0.000000e+00> : vector<24xf32>
    %101 = vector.multi_reduction <add>, %100, %cst_40 [1] : vector<24x24xf32> to vector<24xf32>
    %102 = vector.shape_cast %101 : vector<24xf32> to vector<24x1xf32>
    %103 = tpu.reciprocal %102 {approx = true} : vector<24x1xf32> -> vector<24x1xf32>
    %104 = vector.broadcast %103 : vector<24x1xf32> to vector<24x24xf32>
    %105 = arith.mulf %100, %104 : vector<24x24xf32>
    %106 = arith.truncf %105 : vector<24x24xf32> to vector<24x24xbf16>
    %107 = arith.truncf %89 : vector<24x8xf32> to vector<24x8xbf16>
    %cst_41 = arith.constant dense<0.000000e+00> : vector<24x8xf32>
    %108 = tpu.matmul %106, %107, %cst_41 {dimension_numbers = #tpu.dot_dimension_numbers<[1], [0], [0], [1], [0, 0, 1, 1], [], []>} : vector<24x24xbf16>, vector<24x8xbf16>, vector<24x8xf32> -> vector<24x8xf32>
    %c0_42 = arith.constant 0 : index
    %c24 = arith.constant 24 : index
    %109 = vector.load %arg42[%c0_42, %c24] : memref<24x32xf32, #tpu.memory_space<vmem>>, vector<24x8xf32>
    tpu.vector_store %arg42[%c0_42, %c24], %108 {strides = array<i32>} : memref<24x32xf32, #tpu.memory_space<vmem>>, vector<24x8xf32>,
    %c0_43 = arith.constant 0 : index
    %c0_44 = arith.constant 0 : index
    %110 = vector.load %arg42[%c0_43, %c0_44] : memref<24x32xf32, #tpu.memory_space<vmem>>, vector<24x32xf32>
    %c0_45 = arith.constant 0 : index
    %c0_46 = arith.constant 0 : index
    %c0_47 = arith.constant 0 : index
    %111 = vector.load %arg18[%c0_45, %c0_46, %c0_47] : memref<2x32x32xbf16, #tpu.memory_space<vmem>>, vector<1x32x32xbf16>
    %112 = vector.shape_cast %111 : vector<1x32x32xbf16> to vector<32x32xbf16>
    %113 = arith.truncf %110 : vector<24x32xf32> to vector<24x32xbf16>
    %cst_48 = arith.constant dense<0.000000e+00> : vector<24x32xf32>
    %114 = tpu.matmul %113, %112, %cst_48 {dimension_numbers = #tpu.dot_dimension_numbers<[1], [0], [0], [1], [0, 0, 1, 1], [], []>} : vector<24x32xbf16>, vector<32x32xbf16>, vector<24x32xf32> -> vector<24x32xf32>
    %c0_49 = arith.constant 0 : index
    %c0_50 = arith.constant 0 : index
    %c0_51 = arith.constant 0 : index
    %115 = vector.load %arg19[%c0_49, %c0_50, %c0_51] : memref<2x1x32xf32, #tpu.memory_space<vmem>>, vector<1x1x32xf32>
    %116 = vector.shape_cast %115 : vector<1x1x32xf32> to vector<1x32xf32>
    %117 = vector.broadcast %116 : vector<1x32xf32> to vector<24x32xf32>
    %118 = arith.addf %114, %117 : vector<24x32xf32>
    %119 = arith.addf %9, %118 : vector<24x32xf32>
    %c0_52 = arith.constant 0 : index
    %c0_53 = arith.constant 0 : index
    %c0_54 = arith.constant 0 : index
    %120 = vector.load %arg24[%c0_52, %c0_53, %c0_54] : memref<2x1x32xf32, #tpu.memory_space<vmem>>, vector<1x1x32xf32>
    %121 = vector.shape_cast %120 : vector<1x1x32xf32> to vector<1x32xf32>
    %c0_55 = arith.constant 0 : index
    %c0_56 = arith.constant 0 : index
    %c0_57 = arith.constant 0 : index
    %122 = vector.load %arg25[%c0_55, %c0_56, %c0_57] : memref<2x1x32xf32, #tpu.memory_space<vmem>>, vector<1x1x32xf32>
    %123 = vector.shape_cast %122 : vector<1x1x32xf32> to vector<1x32xf32>
    %cst_58 = arith.constant dense<0.000000e+00> : vector<24xf32>
    %124 = vector.multi_reduction <add>, %119, %cst_58 [1] : vector<24x32xf32> to vector<24xf32>
    %125 = vector.shape_cast %124 : vector<24xf32> to vector<24x1xf32>
    %cst_59 = arith.constant 3.200000e+01 : f32
    %126 = vector.broadcast %cst_59 : f32 to vector<24x1xf32>
    %127 = arith.divf %125, %126 : vector<24x1xf32>
    %128 = vector.broadcast %127 : vector<24x1xf32> to vector<24x32xf32>
    %129 = arith.subf %119, %128 : vector<24x32xf32>
    %130 = arith.mulf %129, %129 : vector<24x32xf32>
    %cst_60 = arith.constant dense<0.000000e+00> : vector<24xf32>
    %131 = vector.multi_reduction <add>, %130, %cst_60 [1] : vector<24x32xf32> to vector<24xf32>
    %132 = vector.shape_cast %131 : vector<24xf32> to vector<24x1xf32>
    %cst_61 = arith.constant 3.200000e+01 : f32
    %133 = vector.broadcast %cst_61 : f32 to vector<24x1xf32>
    %134 = arith.divf %132, %133 : vector<24x1xf32>
    %cst_62 = arith.constant 9.99999974E-6 : f32
    %135 = vector.broadcast %cst_62 : f32 to vector<24x1xf32>
    %136 = arith.addf %134, %135 : vector<24x1xf32>
    %137 = math.rsqrt %136 : vector<24x1xf32>
    %138 = vector.broadcast %137 : vector<24x1xf32> to vector<24x32xf32>
    %139 = arith.mulf %129, %138 : vector<24x32xf32>
    %140 = vector.broadcast %121 : vector<1x32xf32> to vector<24x32xf32>
    %141 = arith.mulf %139, %140 : vector<24x32xf32>
    %142 = vector.broadcast %123 : vector<1x32xf32> to vector<24x32xf32>
    %143 = arith.addf %141, %142 : vector<24x32xf32>
    %c0_63 = arith.constant 0 : index
    %c0_64 = arith.constant 0 : index
    %c0_65 = arith.constant 0 : index
    %144 = vector.load %arg20[%c0_63, %c0_64, %c0_65] : memref<2x32x128xbf16, #tpu.memory_space<vmem>>, vector<1x32x128xbf16>
    %145 = vector.shape_cast %144 : vector<1x32x128xbf16> to vector<32x128xbf16>
    %146 = arith.truncf %143 : vector<24x32xf32> to vector<24x32xbf16>
    %cst_66 = arith.constant dense<0.000000e+00> : vector<24x128xf32>
    %147 = tpu.matmul %146, %145, %cst_66 {dimension_numbers = #tpu.dot_dimension_numbers<[1], [0], [0], [1], [0, 0, 1, 1], [], []>} : vector<24x32xbf16>, vector<32x128xbf16>, vector<24x128xf32> -> vector<24x128xf32>
    %c0_67 = arith.constant 0 : index
    %c0_68 = arith.constant 0 : index
    %c0_69 = arith.constant 0 : index
    %148 = vector.load %arg21[%c0_67, %c0_68, %c0_69] : memref<2x1x128xf32, #tpu.memory_space<vmem>>, vector<1x1x128xf32>
    %149 = vector.shape_cast %148 : vector<1x1x128xf32> to vector<1x128xf32>
    %150 = vector.broadcast %149 : vector<1x128xf32> to vector<24x128xf32>
    %151 = arith.addf %147, %150 : vector<24x128xf32>
    %152 = arith.mulf %151, %151 : vector<24x128xf32>
    %153 = arith.mulf %151, %152 : vector<24x128xf32>
    %cst_70 = arith.constant 4.471500e-02 : f32
    %154 = vector.broadcast %cst_70 : f32 to vector<24x128xf32>
    %155 = arith.mulf %154, %153 : vector<24x128xf32>
    %156 = arith.addf %151, %155 : vector<24x128xf32>
    %cst_71 = arith.constant 0.797884583 : f32
    %157 = vector.broadcast %cst_71 : f32 to vector<24x128xf32>
    %158 = arith.mulf %157, %156 : vector<24x128xf32>
    %159 = math.tanh %158 : vector<24x128xf32>
    %cst_72 = arith.constant 1.000000e+00 : f32
    %160 = vector.broadcast %cst_72 : f32 to vector<24x128xf32>
    %161 = arith.addf %160, %159 : vector<24x128xf32>
    %cst_73 = arith.constant 5.000000e-01 : f32
    %162 = vector.broadcast %cst_73 : f32 to vector<24x128xf32>
    %163 = arith.mulf %162, %161 : vector<24x128xf32>
    %164 = arith.mulf %151, %163 : vector<24x128xf32>
    %c0_74 = arith.constant 0 : index
    %c0_75 = arith.constant 0 : index
    %c0_76 = arith.constant 0 : index
    %165 = vector.load %arg22[%c0_74, %c0_75, %c0_76] : memref<2x128x32xbf16, #tpu.memory_space<vmem>>, vector<1x128x32xbf16>
    %166 = vector.shape_cast %165 : vector<1x128x32xbf16> to vector<128x32xbf16>
    %167 = arith.truncf %164 : vector<24x128xf32> to vector<24x128xbf16>
    %cst_77 = arith.constant dense<0.000000e+00> : vector<24x32xf32>
    %168 = tpu.matmul %167, %166, %cst_77 {dimension_numbers = #tpu.dot_dimension_numbers<[1], [0], [0], [1], [0, 0, 1, 1], [], []>} : vector<24x128xbf16>, vector<128x32xbf16>, vector<24x32xf32> -> vector<24x32xf32>
    %c0_78 = arith.constant 0 : index
    %c0_79 = arith.constant 0 : index
    %c0_80 = arith.constant 0 : index
    %169 = vector.load %arg23[%c0_78, %c0_79, %c0_80] : memref<2x1x32xf32, #tpu.memory_space<vmem>>, vector<1x1x32xf32>
    %170 = vector.shape_cast %169 : vector<1x1x32xf32> to vector<1x32xf32>
    %171 = vector.broadcast %170 : vector<1x32xf32> to vector<24x32xf32>
    %172 = arith.addf %168, %171 : vector<24x32xf32>
    %173 = arith.addf %143, %172 : vector<24x32xf32>
    %c0_81 = arith.constant 0 : index
    %c0_82 = arith.constant 0 : index
    %c0_83 = arith.constant 0 : index
    %174 = vector.load %arg26[%c0_81, %c0_82, %c0_83] : memref<2x1x32xf32, #tpu.memory_space<vmem>>, vector<1x1x32xf32>
    %175 = vector.shape_cast %174 : vector<1x1x32xf32> to vector<1x32xf32>
    %c0_84 = arith.constant 0 : index
    %c0_85 = arith.constant 0 : index
    %c0_86 = arith.constant 0 : index
    %176 = vector.load %arg27[%c0_84, %c0_85, %c0_86] : memref<2x1x32xf32, #tpu.memory_space<vmem>>, vector<1x1x32xf32>
    %177 = vector.shape_cast %176 : vector<1x1x32xf32> to vector<1x32xf32>
    %cst_87 = arith.constant dense<0.000000e+00> : vector<24xf32>
    %178 = vector.multi_reduction <add>, %173, %cst_87 [1] : vector<24x32xf32> to vector<24xf32>
    %179 = vector.shape_cast %178 : vector<24xf32> to vector<24x1xf32>
    %cst_88 = arith.constant 3.200000e+01 : f32
    %180 = vector.broadcast %cst_88 : f32 to vector<24x1xf32>
    %181 = arith.divf %179, %180 : vector<24x1xf32>
    %182 = vector.broadcast %181 : vector<24x1xf32> to vector<24x32xf32>
    %183 = arith.subf %173, %182 : vector<24x32xf32>
    %184 = arith.mulf %183, %183 : vector<24x32xf32>
    %cst_89 = arith.constant dense<0.000000e+00> : vector<24xf32>
    %185 = vector.multi_reduction <add>, %184, %cst_89 [1] : vector<24x32xf32> to vector<24xf32>
    %186 = vector.shape_cast %185 : vector<24xf32> to vector<24x1xf32>
    %cst_90 = arith.constant 3.200000e+01 : f32
    %187 = vector.broadcast %cst_90 : f32 to vector<24x1xf32>
    %188 = arith.divf %186, %187 : vector<24x1xf32>
    %cst_91 = arith.constant 9.99999974E-6 : f32
    %189 = vector.broadcast %cst_91 : f32 to vector<24x1xf32>
    %190 = arith.addf %188, %189 : vector<24x1xf32>
    %191 = math.rsqrt %190 : vector<24x1xf32>
    %192 = vector.broadcast %191 : vector<24x1xf32> to vector<24x32xf32>
    %193 = arith.mulf %183, %192 : vector<24x32xf32>
    %194 = vector.broadcast %175 : vector<1x32xf32> to vector<24x32xf32>
    %195 = arith.mulf %193, %194 : vector<24x32xf32>
    %196 = vector.broadcast %177 : vector<1x32xf32> to vector<24x32xf32>
    %197 = arith.addf %195, %196 : vector<24x32xf32>
    %c1 = arith.constant 1 : index
    %c0_92 = arith.constant 0 : index
    %c0_93 = arith.constant 0 : index
    %198 = vector.load %arg16[%c1, %c0_92, %c0_93] : memref<2x32x96xbf16, #tpu.memory_space<vmem>>, vector<1x32x96xbf16>
    %199 = vector.shape_cast %198 : vector<1x32x96xbf16> to vector<32x96xbf16>
    %200 = arith.truncf %197 : vector<24x32xf32> to vector<24x32xbf16>
    %cst_94 = arith.constant dense<0.000000e+00> : vector<24x96xf32>
    %201 = tpu.matmul %200, %199, %cst_94 {dimension_numbers = #tpu.dot_dimension_numbers<[1], [0], [0], [1], [0, 0, 1, 1], [], []>} : vector<24x32xbf16>, vector<32x96xbf16>, vector<24x96xf32> -> vector<24x96xf32>
    %c1_95 = arith.constant 1 : index
    %c0_96 = arith.constant 0 : index
    %c0_97 = arith.constant 0 : index
    %202 = vector.load %arg17[%c1_95, %c0_96, %c0_97] : memref<2x1x96xf32, #tpu.memory_space<vmem>>, vector<1x1x96xf32>
    %203 = vector.shape_cast %202 : vector<1x1x96xf32> to vector<1x96xf32>
    %204 = vector.broadcast %203 : vector<1x96xf32> to vector<24x96xf32>
    %205 = arith.addf %201, %204 : vector<24x96xf32>
    %206 = vector.extract_strided_slice %205 {offsets = [0, 0], sizes = [24, 8], strides = [1, 1]} : vector<24x96xf32> to vector<24x8xf32>
    %207 = vector.extract_strided_slice %205 {offsets = [0, 32], sizes = [24, 8], strides = [1, 1]} : vector<24x96xf32> to vector<24x8xf32>
    %208 = vector.extract_strided_slice %205 {offsets = [0, 64], sizes = [24, 8], strides = [1, 1]} : vector<24x96xf32> to vector<24x8xf32>
    %209 = arith.truncf %206 : vector<24x8xf32> to vector<24x8xbf16>
    %210 = arith.truncf %207 : vector<24x8xf32> to vector<24x8xbf16>
    %cst_98 = arith.constant dense<0.000000e+00> : vector<24x24xf32>
    %211 = tpu.matmul %209, %210, %cst_98 {dimension_numbers = #tpu.dot_dimension_numbers<[1], [1], [0], [0], [0, 0, 1, 0], [], []>} : vector<24x8xbf16>, vector<24x8xbf16>, vector<24x24xf32> -> vector<24x24xf32>
    %cst_99 = arith.constant 0.353553385 : f32
    %212 = vector.broadcast %cst_99 : f32 to vector<24x24xf32>
    %213 = arith.mulf %211, %212 : vector<24x24xf32>
    %214 = arith.addf %213, %1 : vector<24x24xf32>
    %cst_100 = arith.constant dense<0xFF800000> : vector<24xf32>
    %215 = vector.multi_reduction <maximumf>, %214, %cst_100 [1] : vector<24x24xf32> to vector<24xf32>
    %216 = vector.shape_cast %215 : vector<24xf32> to vector<24x1xf32>
    %217 = vector.broadcast %216 : vector<24x1xf32> to vector<24x24xf32>
    %218 = arith.subf %214, %217 : vector<24x24xf32>
    %219 = math.exp %218 : vector<24x24xf32>
    %cst_101 = arith.constant dense<0.000000e+00> : vector<24xf32>
    %220 = vector.multi_reduction <add>, %219, %cst_101 [1] : vector<24x24xf32> to vector<24xf32>
    %221 = vector.shape_cast %220 : vector<24xf32> to vector<24x1xf32>
    %222 = tpu.reciprocal %221 {approx = true} : vector<24x1xf32> -> vector<24x1xf32>
    %223 = vector.broadcast %222 : vector<24x1xf32> to vector<24x24xf32>
    %224 = arith.mulf %219, %223 : vector<24x24xf32>
    %225 = arith.truncf %224 : vector<24x24xf32> to vector<24x24xbf16>
    %226 = arith.truncf %208 : vector<24x8xf32> to vector<24x8xbf16>
    %cst_102 = arith.constant dense<0.000000e+00> : vector<24x8xf32>
    %227 = tpu.matmul %225, %226, %cst_102 {dimension_numbers = #tpu.dot_dimension_numbers<[1], [0], [0], [1], [0, 0, 1, 1], [], []>} : vector<24x24xbf16>, vector<24x8xbf16>, vector<24x8xf32> -> vector<24x8xf32>
    %c0_103 = arith.constant 0 : index
    %c0_104 = arith.constant 0 : index
    %228 = vector.load %arg42[%c0_103, %c0_104] : memref<24x32xf32, #tpu.memory_space<vmem>>, vector<24x8xf32>
    tpu.vector_store %arg42[%c0_103, %c0_104], %227 {strides = array<i32>} : memref<24x32xf32, #tpu.memory_space<vmem>>, vector<24x8xf32>,
    %229 = vector.extract_strided_slice %205 {offsets = [0, 8], sizes = [24, 8], strides = [1, 1]} : vector<24x96xf32> to vector<24x8xf32>
    %230 = vector.extract_strided_slice %205 {offsets = [0, 40], sizes = [24, 8], strides = [1, 1]} : vector<24x96xf32> to vector<24x8xf32>
    %231 = vector.extract_strided_slice %205 {offsets = [0, 72], sizes = [24, 8], strides = [1, 1]} : vector<24x96xf32> to vector<24x8xf32>
    %232 = arith.truncf %229 : vector<24x8xf32> to vector<24x8xbf16>
    %233 = arith.truncf %230 : vector<24x8xf32> to vector<24x8xbf16>
    %cst_105 = arith.constant dense<0.000000e+00> : vector<24x24xf32>
    %234 = tpu.matmul %232, %233, %cst_105 {dimension_numbers = #tpu.dot_dimension_numbers<[1], [1], [0], [0], [0, 0, 1, 0], [], []>} : vector<24x8xbf16>, vector<24x8xbf16>, vector<24x24xf32> -> vector<24x24xf32>
    %cst_106 = arith.constant 0.353553385 : f32
    %235 = vector.broadcast %cst_106 : f32 to vector<24x24xf32>
    %236 = arith.mulf %234, %235 : vector<24x24xf32>
    %237 = arith.addf %236, %1 : vector<24x24xf32>
    %cst_107 = arith.constant dense<0xFF800000> : vector<24xf32>
    %238 = vector.multi_reduction <maximumf>, %237, %cst_107 [1] : vector<24x24xf32> to vector<24xf32>
    %239 = vector.shape_cast %238 : vector<24xf32> to vector<24x1xf32>
    %240 = vector.broadcast %239 : vector<24x1xf32> to vector<24x24xf32>
    %241 = arith.subf %237, %240 : vector<24x24xf32>
    %242 = math.exp %241 : vector<24x24xf32>
    %cst_108 = arith.constant dense<0.000000e+00> : vector<24xf32>
    %243 = vector.multi_reduction <add>, %242, %cst_108 [1] : vector<24x24xf32> to vector<24xf32>
    %244 = vector.shape_cast %243 : vector<24xf32> to vector<24x1xf32>
    %245 = tpu.reciprocal %244 {approx = true} : vector<24x1xf32> -> vector<24x1xf32>
    %246 = vector.broadcast %245 : vector<24x1xf32> to vector<24x24xf32>
    %247 = arith.mulf %242, %246 : vector<24x24xf32>
    %248 = arith.truncf %247 : vector<24x24xf32> to vector<24x24xbf16>
    %249 = arith.truncf %231 : vector<24x8xf32> to vector<24x8xbf16>
    %cst_109 = arith.constant dense<0.000000e+00> : vector<24x8xf32>
    %250 = tpu.matmul %248, %249, %cst_109 {dimension_numbers = #tpu.dot_dimension_numbers<[1], [0], [0], [1], [0, 0, 1, 1], [], []>} : vector<24x24xbf16>, vector<24x8xbf16>, vector<24x8xf32> -> vector<24x8xf32>
    %c0_110 = arith.constant 0 : index
    %c8_111 = arith.constant 8 : index
    %251 = vector.load %arg42[%c0_110, %c8_111] : memref<24x32xf32, #tpu.memory_space<vmem>>, vector<24x8xf32>
    tpu.vector_store %arg42[%c0_110, %c8_111], %250 {strides = array<i32>} : memref<24x32xf32, #tpu.memory_space<vmem>>, vector<24x8xf32>,
    %252 = vector.extract_strided_slice %205 {offsets = [0, 16], sizes = [24, 8], strides = [1, 1]} : vector<24x96xf32> to vector<24x8xf32>
    %253 = vector.extract_strided_slice %205 {offsets = [0, 48], sizes = [24, 8], strides = [1, 1]} : vector<24x96xf32> to vector<24x8xf32>
    %254 = vector.extract_strided_slice %205 {offsets = [0, 80], sizes = [24, 8], strides = [1, 1]} : vector<24x96xf32> to vector<24x8xf32>
    %255 = arith.truncf %252 : vector<24x8xf32> to vector<24x8xbf16>
    %256 = arith.truncf %253 : vector<24x8xf32> to vector<24x8xbf16>
    %cst_112 = arith.constant dense<0.000000e+00> : vector<24x24xf32>
    %257 = tpu.matmul %255, %256, %cst_112 {dimension_numbers = #tpu.dot_dimension_numbers<[1], [1], [0], [0], [0, 0, 1, 0], [], []>} : vector<24x8xbf16>, vector<24x8xbf16>, vector<24x24xf32> -> vector<24x24xf32>
    %cst_113 = arith.constant 0.353553385 : f32
    %258 = vector.broadcast %cst_113 : f32 to vector<24x24xf32>
    %259 = arith.mulf %257, %258 : vector<24x24xf32>
    %260 = arith.addf %259, %1 : vector<24x24xf32>
    %cst_114 = arith.constant dense<0xFF800000> : vector<24xf32>
    %261 = vector.multi_reduction <maximumf>, %260, %cst_114 [1] : vector<24x24xf32> to vector<24xf32>
    %262 = vector.shape_cast %261 : vector<24xf32> to vector<24x1xf32>
    %263 = vector.broadcast %262 : vector<24x1xf32> to vector<24x24xf32>
    %264 = arith.subf %260, %263 : vector<24x24xf32>
    %265 = math.exp %264 : vector<24x24xf32>
    %cst_115 = arith.constant dense<0.000000e+00> : vector<24xf32>
    %266 = vector.multi_reduction <add>, %265, %cst_115 [1] : vector<24x24xf32> to vector<24xf32>
    %267 = vector.shape_cast %266 : vector<24xf32> to vector<24x1xf32>
    %268 = tpu.reciprocal %267 {approx = true} : vector<24x1xf32> -> vector<24x1xf32>
    %269 = vector.broadcast %268 : vector<24x1xf32> to vector<24x24xf32>
    %270 = arith.mulf %265, %269 : vector<24x24xf32>
    %271 = arith.truncf %270 : vector<24x24xf32> to vector<24x24xbf16>
    %272 = arith.truncf %254 : vector<24x8xf32> to vector<24x8xbf16>
    %cst_116 = arith.constant dense<0.000000e+00> : vector<24x8xf32>
    %273 = tpu.matmul %271, %272, %cst_116 {dimension_numbers = #tpu.dot_dimension_numbers<[1], [0], [0], [1], [0, 0, 1, 1], [], []>} : vector<24x24xbf16>, vector<24x8xbf16>, vector<24x8xf32> -> vector<24x8xf32>
    %c0_117 = arith.constant 0 : index
    %c16_118 = arith.constant 16 : index
    %274 = vector.load %arg42[%c0_117, %c16_118] : memref<24x32xf32, #tpu.memory_space<vmem>>, vector<24x8xf32>
    tpu.vector_store %arg42[%c0_117, %c16_118], %273 {strides = array<i32>} : memref<24x32xf32, #tpu.memory_space<vmem>>, vector<24x8xf32>,
    %275 = vector.extract_strided_slice %205 {offsets = [0, 24], sizes = [24, 8], strides = [1, 1]} : vector<24x96xf32> to vector<24x8xf32>
    %276 = vector.extract_strided_slice %205 {offsets = [0, 56], sizes = [24, 8], strides = [1, 1]} : vector<24x96xf32> to vector<24x8xf32>
    %277 = vector.extract_strided_slice %205 {offsets = [0, 88], sizes = [24, 8], strides = [1, 1]} : vector<24x96xf32> to vector<24x8xf32>
    %278 = arith.truncf %275 : vector<24x8xf32> to vector<24x8xbf16>
    %279 = arith.truncf %276 : vector<24x8xf32> to vector<24x8xbf16>
    %cst_119 = arith.constant dense<0.000000e+00> : vector<24x24xf32>
    %280 = tpu.matmul %278, %279, %cst_119 {dimension_numbers = #tpu.dot_dimension_numbers<[1], [1], [0], [0], [0, 0, 1, 0], [], []>} : vector<24x8xbf16>, vector<24x8xbf16>, vector<24x24xf32> -> vector<24x24xf32>
    %cst_120 = arith.constant 0.353553385 : f32
    %281 = vector.broadcast %cst_120 : f32 to vector<24x24xf32>
    %282 = arith.mulf %280, %281 : vector<24x24xf32>
    %283 = arith.addf %282, %1 : vector<24x24xf32>
    %cst_121 = arith.constant dense<0xFF800000> : vector<24xf32>
    %284 = vector.multi_reduction <maximumf>, %283, %cst_121 [1] : vector<24x24xf32> to vector<24xf32>
    %285 = vector.shape_cast %284 : vector<24xf32> to vector<24x1xf32>
    %286 = vector.broadcast %285 : vector<24x1xf32> to vector<24x24xf32>
    %287 = arith.subf %283, %286 : vector<24x24xf32>
    %288 = math.exp %287 : vector<24x24xf32>
    %cst_122 = arith.constant dense<0.000000e+00> : vector<24xf32>
    %289 = vector.multi_reduction <add>, %288, %cst_122 [1] : vector<24x24xf32> to vector<24xf32>
    %290 = vector.shape_cast %289 : vector<24xf32> to vector<24x1xf32>
    %291 = tpu.reciprocal %290 {approx = true} : vector<24x1xf32> -> vector<24x1xf32>
    %292 = vector.broadcast %291 : vector<24x1xf32> to vector<24x24xf32>
    %293 = arith.mulf %288, %292 : vector<24x24xf32>
    %294 = arith.truncf %293 : vector<24x24xf32> to vector<24x24xbf16>
    %295 = arith.truncf %277 : vector<24x8xf32> to vector<24x8xbf16>
    %cst_123 = arith.constant dense<0.000000e+00> : vector<24x8xf32>
    %296 = tpu.matmul %294, %295, %cst_123 {dimension_numbers = #tpu.dot_dimension_numbers<[1], [0], [0], [1], [0, 0, 1, 1], [], []>} : vector<24x24xbf16>, vector<24x8xbf16>, vector<24x8xf32> -> vector<24x8xf32>
    %c0_124 = arith.constant 0 : index
    %c24_125 = arith.constant 24 : index
    %297 = vector.load %arg42[%c0_124, %c24_125] : memref<24x32xf32, #tpu.memory_space<vmem>>, vector<24x8xf32>
    tpu.vector_store %arg42[%c0_124, %c24_125], %296 {strides = array<i32>} : memref<24x32xf32, #tpu.memory_space<vmem>>, vector<24x8xf32>,
    %c0_126 = arith.constant 0 : index
    %c0_127 = arith.constant 0 : index
    %298 = vector.load %arg42[%c0_126, %c0_127] : memref<24x32xf32, #tpu.memory_space<vmem>>, vector<24x32xf32>
    %c1_128 = arith.constant 1 : index
    %c0_129 = arith.constant 0 : index
    %c0_130 = arith.constant 0 : index
    %299 = vector.load %arg18[%c1_128, %c0_129, %c0_130] : memref<2x32x32xbf16, #tpu.memory_space<vmem>>, vector<1x32x32xbf16>
    %300 = vector.shape_cast %299 : vector<1x32x32xbf16> to vector<32x32xbf16>
    %301 = arith.truncf %298 : vector<24x32xf32> to vector<24x32xbf16>
    %cst_131 = arith.constant dense<0.000000e+00> : vector<24x32xf32>
    %302 = tpu.matmul %301, %300, %cst_131 {dimension_numbers = #tpu.dot_dimension_numbers<[1], [0], [0], [1], [0, 0, 1, 1], [], []>} : vector<24x32xbf16>, vector<32x32xbf16>, vector<24x32xf32> -> vector<24x32xf32>
    %c1_132 = arith.constant 1 : index
    %c0_133 = arith.constant 0 : index
    %c0_134 = arith.constant 0 : index
    %303 = vector.load %arg19[%c1_132, %c0_133, %c0_134] : memref<2x1x32xf32, #tpu.memory_space<vmem>>, vector<1x1x32xf32>
    %304 = vector.shape_cast %303 : vector<1x1x32xf32> to vector<1x32xf32>
    %305 = vector.broadcast %304 : vector<1x32xf32> to vector<24x32xf32>
    %306 = arith.addf %302, %305 : vector<24x32xf32>
    %307 = arith.addf %197, %306 : vector<24x32xf32>
    %c1_135 = arith.constant 1 : index
    %c0_136 = arith.constant 0 : index
    %c0_137 = arith.constant 0 : index
    %308 = vector.load %arg24[%c1_135, %c0_136, %c0_137] : memref<2x1x32xf32, #tpu.memory_space<vmem>>, vector<1x1x32xf32>
    %309 = vector.shape_cast %308 : vector<1x1x32xf32> to vector<1x32xf32>
    %c1_138 = arith.constant 1 : index
    %c0_139 = arith.constant 0 : index
    %c0_140 = arith.constant 0 : index
    %310 = vector.load %arg25[%c1_138, %c0_139, %c0_140] : memref<2x1x32xf32, #tpu.memory_space<vmem>>, vector<1x1x32xf32>
    %311 = vector.shape_cast %310 : vector<1x1x32xf32> to vector<1x32xf32>
    %cst_141 = arith.constant dense<0.000000e+00> : vector<24xf32>
    %312 = vector.multi_reduction <add>, %307, %cst_141 [1] : vector<24x32xf32> to vector<24xf32>
    %313 = vector.shape_cast %312 : vector<24xf32> to vector<24x1xf32>
    %cst_142 = arith.constant 3.200000e+01 : f32
    %314 = vector.broadcast %cst_142 : f32 to vector<24x1xf32>
    %315 = arith.divf %313, %314 : vector<24x1xf32>
    %316 = vector.broadcast %315 : vector<24x1xf32> to vector<24x32xf32>
    %317 = arith.subf %307, %316 : vector<24x32xf32>
    %318 = arith.mulf %317, %317 : vector<24x32xf32>
    %cst_143 = arith.constant dense<0.000000e+00> : vector<24xf32>
    %319 = vector.multi_reduction <add>, %318, %cst_143 [1] : vector<24x32xf32> to vector<24xf32>
    %320 = vector.shape_cast %319 : vector<24xf32> to vector<24x1xf32>
    %cst_144 = arith.constant 3.200000e+01 : f32
    %321 = vector.broadcast %cst_144 : f32 to vector<24x1xf32>
    %322 = arith.divf %320, %321 : vector<24x1xf32>
    %cst_145 = arith.constant 9.99999974E-6 : f32
    %323 = vector.broadcast %cst_145 : f32 to vector<24x1xf32>
    %324 = arith.addf %322, %323 : vector<24x1xf32>
    %325 = math.rsqrt %324 : vector<24x1xf32>
    %326 = vector.broadcast %325 : vector<24x1xf32> to vector<24x32xf32>
    %327 = arith.mulf %317, %326 : vector<24x32xf32>
    %328 = vector.broadcast %309 : vector<1x32xf32> to vector<24x32xf32>
    %329 = arith.mulf %327, %328 : vector<24x32xf32>
    %330 = vector.broadcast %311 : vector<1x32xf32> to vector<24x32xf32>
    %331 = arith.addf %329, %330 : vector<24x32xf32>
    %c1_146 = arith.constant 1 : index
    %c0_147 = arith.constant 0 : index
    %c0_148 = arith.constant 0 : index
    %332 = vector.load %arg20[%c1_146, %c0_147, %c0_148] : memref<2x32x128xbf16, #tpu.memory_space<vmem>>, vector<1x32x128xbf16>
    %333 = vector.shape_cast %332 : vector<1x32x128xbf16> to vector<32x128xbf16>
    %334 = arith.truncf %331 : vector<24x32xf32> to vector<24x32xbf16>
    %cst_149 = arith.constant dense<0.000000e+00> : vector<24x128xf32>
    %335 = tpu.matmul %334, %333, %cst_149 {dimension_numbers = #tpu.dot_dimension_numbers<[1], [0], [0], [1], [0, 0, 1, 1], [], []>} : vector<24x32xbf16>, vector<32x128xbf16>, vector<24x128xf32> -> vector<24x128xf32>
    %c1_150 = arith.constant 1 : index
    %c0_151 = arith.constant 0 : index
    %c0_152 = arith.constant 0 : index
    %336 = vector.load %arg21[%c1_150, %c0_151, %c0_152] : memref<2x1x128xf32, #tpu.memory_space<vmem>>, vector<1x1x128xf32>
    %337 = vector.shape_cast %336 : vector<1x1x128xf32> to vector<1x128xf32>
    %338 = vector.broadcast %337 : vector<1x128xf32> to vector<24x128xf32>
    %339 = arith.addf %335, %338 : vector<24x128xf32>
    %340 = arith.mulf %339, %339 : vector<24x128xf32>
    %341 = arith.mulf %339, %340 : vector<24x128xf32>
    %cst_153 = arith.constant 4.471500e-02 : f32
    %342 = vector.broadcast %cst_153 : f32 to vector<24x128xf32>
    %343 = arith.mulf %342, %341 : vector<24x128xf32>
    %344 = arith.addf %339, %343 : vector<24x128xf32>
    %cst_154 = arith.constant 0.797884583 : f32
    %345 = vector.broadcast %cst_154 : f32 to vector<24x128xf32>
    %346 = arith.mulf %345, %344 : vector<24x128xf32>
    %347 = math.tanh %346 : vector<24x128xf32>
    %cst_155 = arith.constant 1.000000e+00 : f32
    %348 = vector.broadcast %cst_155 : f32 to vector<24x128xf32>
    %349 = arith.addf %348, %347 : vector<24x128xf32>
    %cst_156 = arith.constant 5.000000e-01 : f32
    %350 = vector.broadcast %cst_156 : f32 to vector<24x128xf32>
    %351 = arith.mulf %350, %349 : vector<24x128xf32>
    %352 = arith.mulf %339, %351 : vector<24x128xf32>
    %c1_157 = arith.constant 1 : index
    %c0_158 = arith.constant 0 : index
    %c0_159 = arith.constant 0 : index
    %353 = vector.load %arg22[%c1_157, %c0_158, %c0_159] : memref<2x128x32xbf16, #tpu.memory_space<vmem>>, vector<1x128x32xbf16>
    %354 = vector.shape_cast %353 : vector<1x128x32xbf16> to vector<128x32xbf16>
    %355 = arith.truncf %352 : vector<24x128xf32> to vector<24x128xbf16>
    %cst_160 = arith.constant dense<0.000000e+00> : vector<24x32xf32>
    %356 = tpu.matmul %355, %354, %cst_160 {dimension_numbers = #tpu.dot_dimension_numbers<[1], [0], [0], [1], [0, 0, 1, 1], [], []>} : vector<24x128xbf16>, vector<128x32xbf16>, vector<24x32xf32> -> vector<24x32xf32>
    %c1_161 = arith.constant 1 : index
    %c0_162 = arith.constant 0 : index
    %c0_163 = arith.constant 0 : index
    %357 = vector.load %arg23[%c1_161, %c0_162, %c0_163] : memref<2x1x32xf32, #tpu.memory_space<vmem>>, vector<1x1x32xf32>
    %358 = vector.shape_cast %357 : vector<1x1x32xf32> to vector<1x32xf32>
    %359 = vector.broadcast %358 : vector<1x32xf32> to vector<24x32xf32>
    %360 = arith.addf %356, %359 : vector<24x32xf32>
    %361 = arith.addf %331, %360 : vector<24x32xf32>
    %c1_164 = arith.constant 1 : index
    %c0_165 = arith.constant 0 : index
    %c0_166 = arith.constant 0 : index
    %362 = vector.load %arg26[%c1_164, %c0_165, %c0_166] : memref<2x1x32xf32, #tpu.memory_space<vmem>>, vector<1x1x32xf32>
    %363 = vector.shape_cast %362 : vector<1x1x32xf32> to vector<1x32xf32>
    %c1_167 = arith.constant 1 : index
    %c0_168 = arith.constant 0 : index
    %c0_169 = arith.constant 0 : index
    %364 = vector.load %arg27[%c1_167, %c0_168, %c0_169] : memref<2x1x32xf32, #tpu.memory_space<vmem>>, vector<1x1x32xf32>
    %365 = vector.shape_cast %364 : vector<1x1x32xf32> to vector<1x32xf32>
    %cst_170 = arith.constant dense<0.000000e+00> : vector<24xf32>
    %366 = vector.multi_reduction <add>, %361, %cst_170 [1] : vector<24x32xf32> to vector<24xf32>
    %367 = vector.shape_cast %366 : vector<24xf32> to vector<24x1xf32>
    %cst_171 = arith.constant 3.200000e+01 : f32
    %368 = vector.broadcast %cst_171 : f32 to vector<24x1xf32>
    %369 = arith.divf %367, %368 : vector<24x1xf32>
    %370 = vector.broadcast %369 : vector<24x1xf32> to vector<24x32xf32>
    %371 = arith.subf %361, %370 : vector<24x32xf32>
    %372 = arith.mulf %371, %371 : vector<24x32xf32>
    %cst_172 = arith.constant dense<0.000000e+00> : vector<24xf32>
    %373 = vector.multi_reduction <add>, %372, %cst_172 [1] : vector<24x32xf32> to vector<24xf32>
    %374 = vector.shape_cast %373 : vector<24xf32> to vector<24x1xf32>
    %cst_173 = arith.constant 3.200000e+01 : f32
    %375 = vector.broadcast %cst_173 : f32 to vector<24x1xf32>
    %376 = arith.divf %374, %375 : vector<24x1xf32>
    %cst_174 = arith.constant 9.99999974E-6 : f32
    %377 = vector.broadcast %cst_174 : f32 to vector<24x1xf32>
    %378 = arith.addf %376, %377 : vector<24x1xf32>
    %379 = math.rsqrt %378 : vector<24x1xf32>
    %380 = vector.broadcast %379 : vector<24x1xf32> to vector<24x32xf32>
    %381 = arith.mulf %371, %380 : vector<24x32xf32>
    %382 = vector.broadcast %363 : vector<1x32xf32> to vector<24x32xf32>
    %383 = arith.mulf %381, %382 : vector<24x32xf32>
    %384 = vector.broadcast %365 : vector<1x32xf32> to vector<24x32xf32>
    %385 = arith.addf %383, %384 : vector<24x32xf32>
    %c0_175 = arith.constant 0 : index
    %c0_176 = arith.constant 0 : index
    %386 = vector.load %arg2[%c0_175, %c0_176] : memref<2x32xf32, #tpu.memory_space<vmem>>, vector<2x32xf32>
    %c0_177 = arith.constant 0 : index
    %c0_178 = arith.constant 0 : index
    %387 = vector.load %arg10[%c0_177, %c0_178] : memref<32x32xbf16, #tpu.memory_space<vmem>>, vector<32x32xbf16>
    %388 = arith.truncf %386 : vector<2x32xf32> to vector<2x32xbf16>
    %cst_179 = arith.constant dense<0.000000e+00> : vector<2x32xf32>
    %389 = tpu.matmul %388, %387, %cst_179 {dimension_numbers = #tpu.dot_dimension_numbers<[1], [0], [0], [1], [0, 0, 1, 1], [], []>} : vector<2x32xbf16>, vector<32x32xbf16>, vector<2x32xf32> -> vector<2x32xf32>
    %c0_180 = arith.constant 0 : index
    %c0_181 = arith.constant 0 : index
    %390 = vector.load %arg11[%c0_180, %c0_181] : memref<1x32xf32, #tpu.memory_space<vmem>>, vector<1x32xf32>
    %391 = vector.broadcast %390 : vector<1x32xf32> to vector<2x32xf32>
    %392 = arith.addf %389, %391 : vector<2x32xf32>
    %393 = arith.negf %392 : vector<2x32xf32>
    %394 = math.exp %393 : vector<2x32xf32>
    %cst_182 = arith.constant 1.000000e+00 : f32
    %395 = vector.broadcast %cst_182 : f32 to vector<2x32xf32>
    %396 = arith.addf %395, %394 : vector<2x32xf32>
    %397 = arith.divf %395, %396 : vector<2x32xf32>
    %398 = arith.mulf %392, %397 : vector<2x32xf32>
    %c0_183 = arith.constant 0 : index
    %c0_184 = arith.constant 0 : index
    %399 = vector.load %arg12[%c0_183, %c0_184] : memref<32x32xbf16, #tpu.memory_space<vmem>>, vector<32x32xbf16>
    %400 = arith.truncf %398 : vector<2x32xf32> to vector<2x32xbf16>
    %cst_185 = arith.constant dense<0.000000e+00> : vector<2x32xf32>
    %401 = tpu.matmul %400, %399, %cst_185 {dimension_numbers = #tpu.dot_dimension_numbers<[1], [0], [0], [1], [0, 0, 1, 1], [], []>} : vector<2x32xbf16>, vector<32x32xbf16>, vector<2x32xf32> -> vector<2x32xf32>
    %c0_186 = arith.constant 0 : index
    %c0_187 = arith.constant 0 : index
    %402 = vector.load %arg13[%c0_186, %c0_187] : memref<1x32xf32, #tpu.memory_space<vmem>>, vector<1x32xf32>
    %403 = vector.broadcast %402 : vector<1x32xf32> to vector<2x32xf32>
    %404 = arith.addf %401, %403 : vector<2x32xf32>
    %c0_188 = arith.constant 0 : index
    %c0_189 = arith.constant 0 : index
    %405 = vector.load %arg0[%c0_188, %c0_189] : memref<16x15xf32, #tpu.memory_space<vmem>>, vector<16x15xf32>
    %c0_190 = arith.constant 0 : index
    %c0_191 = arith.constant 0 : index
    %406 = vector.load %arg6[%c0_190, %c0_191] : memref<15x32xbf16, #tpu.memory_space<vmem>>, vector<15x32xbf16>
    %407 = arith.truncf %405 : vector<16x15xf32> to vector<16x15xbf16>
    %cst_192 = arith.constant dense<0.000000e+00> : vector<16x32xf32>
    %408 = tpu.matmul %407, %406, %cst_192 {dimension_numbers = #tpu.dot_dimension_numbers<[1], [0], [0], [1], [0, 0, 1, 1], [], []>} : vector<16x15xbf16>, vector<15x32xbf16>, vector<16x32xf32> -> vector<16x32xf32>
    %c0_193 = arith.constant 0 : index
    %c0_194 = arith.constant 0 : index
    %409 = vector.load %arg7[%c0_193, %c0_194] : memref<1x32xf32, #tpu.memory_space<vmem>>, vector<1x32xf32>
    %410 = vector.broadcast %409 : vector<1x32xf32> to vector<16x32xf32>
    %411 = arith.addf %408, %410 : vector<16x32xf32>
    %412 = vector.extract_strided_slice %385 {offsets = [0, 0], sizes = [12, 32], strides = [1, 1]} : vector<24x32xf32> to vector<12x32xf32>
    %cst_195 = arith.constant dense<0.000000e+00> : vector<32xf32>
    %413 = vector.multi_reduction <add>, %412, %cst_195 [0] : vector<12x32xf32> to vector<32xf32>
    %414 = vector.shape_cast %413 : vector<32xf32> to vector<1x32xf32>
    %cst_196 = arith.constant 1.200000e+01 : f32
    %415 = vector.broadcast %cst_196 : f32 to vector<1x32xf32>
    %416 = arith.divf %414, %415 : vector<1x32xf32>
    %417 = vector.extract_strided_slice %404 {offsets = [0, 0], sizes = [1, 32], strides = [1, 1]} : vector<2x32xf32> to vector<1x32xf32>
    %418 = vector.extract_strided_slice %0 {offsets = [0, 0], sizes = [1, 32], strides = [1, 1]} : vector<10x32xf32> to vector<1x32xf32>
    %419 = arith.addf %417, %418 : vector<1x32xf32>
    %c0_197 = arith.constant 0 : index
    %c0_198 = arith.constant 0 : index
    %420 = vector.load %arg41[%c0_197, %c0_198] : memref<20x32xf32, #tpu.memory_space<vmem>>, vector<1x32xf32>
    tpu.vector_store %arg41[%c0_197, %c0_198], %419 {strides = array<i32>} : memref<20x32xf32, #tpu.memory_space<vmem>>, vector<1x32xf32>,
    %421 = vector.extract_strided_slice %0 {offsets = [1, 0], sizes = [1, 32], strides = [1, 1]} : vector<10x32xf32> to vector<1x32xf32>
    %422 = arith.addf %416, %421 : vector<1x32xf32>
    %c1_199 = arith.constant 1 : index
    %c0_200 = arith.constant 0 : index
    %423 = vector.load %arg41[%c1_199, %c0_200] : memref<20x32xf32, #tpu.memory_space<vmem>>, vector<1x32xf32>
    tpu.vector_store %arg41[%c1_199, %c0_200], %422 {strides = array<i32>} : memref<20x32xf32, #tpu.memory_space<vmem>>, vector<1x32xf32>,
    %424 = vector.extract_strided_slice %411 {offsets = [0, 0], sizes = [8, 32], strides = [1, 1]} : vector<16x32xf32> to vector<8x32xf32>
    %425 = vector.extract_strided_slice %0 {offsets = [2, 0], sizes = [8, 32], strides = [1, 1]} : vector<10x32xf32> to vector<8x32xf32>
    %426 = arith.addf %424, %425 : vector<8x32xf32>
    %c2 = arith.constant 2 : index
    %c0_201 = arith.constant 0 : index
    %427 = vector.load %arg41[%c2, %c0_201] : memref<20x32xf32, #tpu.memory_space<vmem>>, vector<8x32xf32>
    tpu.vector_store %arg41[%c2, %c0_201], %426 {strides = array<i32>} : memref<20x32xf32, #tpu.memory_space<vmem>>, vector<8x32xf32>,
    %428 = vector.extract_strided_slice %385 {offsets = [12, 0], sizes = [12, 32], strides = [1, 1]} : vector<24x32xf32> to vector<12x32xf32>
    %cst_202 = arith.constant dense<0.000000e+00> : vector<32xf32>
    %429 = vector.multi_reduction <add>, %428, %cst_202 [0] : vector<12x32xf32> to vector<32xf32>
    %430 = vector.shape_cast %429 : vector<32xf32> to vector<1x32xf32>
    %cst_203 = arith.constant 1.200000e+01 : f32
    %431 = vector.broadcast %cst_203 : f32 to vector<1x32xf32>
    %432 = arith.divf %430, %431 : vector<1x32xf32>
    %433 = vector.extract_strided_slice %404 {offsets = [1, 0], sizes = [1, 32], strides = [1, 1]} : vector<2x32xf32> to vector<1x32xf32>
    %434 = vector.extract_strided_slice %0 {offsets = [0, 0], sizes = [1, 32], strides = [1, 1]} : vector<10x32xf32> to vector<1x32xf32>
    %435 = arith.addf %433, %434 : vector<1x32xf32>
    %c10 = arith.constant 10 : index
    %c0_204 = arith.constant 0 : index
    %436 = vector.load %arg41[%c10, %c0_204] : memref<20x32xf32, #tpu.memory_space<vmem>>, vector<1x32xf32>
    tpu.vector_store %arg41[%c10, %c0_204], %435 {strides = array<i32>} : memref<20x32xf32, #tpu.memory_space<vmem>>, vector<1x32xf32>,
    %437 = vector.extract_strided_slice %0 {offsets = [1, 0], sizes = [1, 32], strides = [1, 1]} : vector<10x32xf32> to vector<1x32xf32>
    %438 = arith.addf %432, %437 : vector<1x32xf32>
    %c11 = arith.constant 11 : index
    %c0_205 = arith.constant 0 : index
    %439 = vector.load %arg41[%c11, %c0_205] : memref<20x32xf32, #tpu.memory_space<vmem>>, vector<1x32xf32>
    tpu.vector_store %arg41[%c11, %c0_205], %438 {strides = array<i32>} : memref<20x32xf32, #tpu.memory_space<vmem>>, vector<1x32xf32>,
    %440 = vector.extract_strided_slice %411 {offsets = [8, 0], sizes = [8, 32], strides = [1, 1]} : vector<16x32xf32> to vector<8x32xf32>
    %441 = vector.extract_strided_slice %0 {offsets = [2, 0], sizes = [8, 32], strides = [1, 1]} : vector<10x32xf32> to vector<8x32xf32>
    %442 = arith.addf %440, %441 : vector<8x32xf32>
    %c12 = arith.constant 12 : index
    %c0_206 = arith.constant 0 : index
    %443 = vector.load %arg41[%c12, %c0_206] : memref<20x32xf32, #tpu.memory_space<vmem>>, vector<8x32xf32>
    tpu.vector_store %arg41[%c12, %c0_206], %442 {strides = array<i32>} : memref<20x32xf32, #tpu.memory_space<vmem>>, vector<8x32xf32>,
    %c0_207 = arith.constant 0 : index
    %c0_208 = arith.constant 0 : index
    %444 = vector.load %arg41[%c0_207, %c0_208] : memref<20x32xf32, #tpu.memory_space<vmem>>, vector<20x32xf32>
    %c0_209 = arith.constant 0 : index
    %c0_210 = arith.constant 0 : index
    %c0_211 = arith.constant 0 : index
    %445 = vector.load %arg28[%c0_209, %c0_210, %c0_211] : memref<2x32x96xbf16, #tpu.memory_space<vmem>>, vector<1x32x96xbf16>
    %446 = vector.shape_cast %445 : vector<1x32x96xbf16> to vector<32x96xbf16>
    %447 = arith.truncf %444 : vector<20x32xf32> to vector<20x32xbf16>
    %cst_212 = arith.constant dense<0.000000e+00> : vector<20x96xf32>
    %448 = tpu.matmul %447, %446, %cst_212 {dimension_numbers = #tpu.dot_dimension_numbers<[1], [0], [0], [1], [0, 0, 1, 1], [], []>} : vector<20x32xbf16>, vector<32x96xbf16>, vector<20x96xf32> -> vector<20x96xf32>
    %c0_213 = arith.constant 0 : index
    %c0_214 = arith.constant 0 : index
    %c0_215 = arith.constant 0 : index
    %449 = vector.load %arg29[%c0_213, %c0_214, %c0_215] : memref<2x1x96xf32, #tpu.memory_space<vmem>>, vector<1x1x96xf32>
    %450 = vector.shape_cast %449 : vector<1x1x96xf32> to vector<1x96xf32>
    %451 = vector.broadcast %450 : vector<1x96xf32> to vector<20x96xf32>
    %452 = arith.addf %448, %451 : vector<20x96xf32>
    %453 = vector.extract_strided_slice %452 {offsets = [0, 0], sizes = [20, 8], strides = [1, 1]} : vector<20x96xf32> to vector<20x8xf32>
    %454 = vector.extract_strided_slice %452 {offsets = [0, 32], sizes = [20, 8], strides = [1, 1]} : vector<20x96xf32> to vector<20x8xf32>
    %455 = vector.extract_strided_slice %452 {offsets = [0, 64], sizes = [20, 8], strides = [1, 1]} : vector<20x96xf32> to vector<20x8xf32>
    %456 = arith.truncf %453 : vector<20x8xf32> to vector<20x8xbf16>
    %457 = arith.truncf %454 : vector<20x8xf32> to vector<20x8xbf16>
    %cst_216 = arith.constant dense<0.000000e+00> : vector<20x20xf32>
    %458 = tpu.matmul %456, %457, %cst_216 {dimension_numbers = #tpu.dot_dimension_numbers<[1], [1], [0], [0], [0, 0, 1, 0], [], []>} : vector<20x8xbf16>, vector<20x8xbf16>, vector<20x20xf32> -> vector<20x20xf32>
    %cst_217 = arith.constant 0.353553385 : f32
    %459 = vector.broadcast %cst_217 : f32 to vector<20x20xf32>
    %460 = arith.mulf %458, %459 : vector<20x20xf32>
    %461 = arith.addf %460, %2 : vector<20x20xf32>
    %cst_218 = arith.constant dense<0xFF800000> : vector<20xf32>
    %462 = vector.multi_reduction <maximumf>, %461, %cst_218 [1] : vector<20x20xf32> to vector<20xf32>
    %463 = vector.shape_cast %462 : vector<20xf32> to vector<20x1xf32>
    %464 = vector.broadcast %463 : vector<20x1xf32> to vector<20x20xf32>
    %465 = arith.subf %461, %464 : vector<20x20xf32>
    %466 = math.exp %465 : vector<20x20xf32>
    %cst_219 = arith.constant dense<0.000000e+00> : vector<20xf32>
    %467 = vector.multi_reduction <add>, %466, %cst_219 [1] : vector<20x20xf32> to vector<20xf32>
    %468 = vector.shape_cast %467 : vector<20xf32> to vector<20x1xf32>
    %469 = tpu.reciprocal %468 {approx = true} : vector<20x1xf32> -> vector<20x1xf32>
    %470 = vector.broadcast %469 : vector<20x1xf32> to vector<20x20xf32>
    %471 = arith.mulf %466, %470 : vector<20x20xf32>
    %472 = arith.truncf %471 : vector<20x20xf32> to vector<20x20xbf16>
    %473 = arith.truncf %455 : vector<20x8xf32> to vector<20x8xbf16>
    %cst_220 = arith.constant dense<0.000000e+00> : vector<20x8xf32>
    %474 = tpu.matmul %472, %473, %cst_220 {dimension_numbers = #tpu.dot_dimension_numbers<[1], [0], [0], [1], [0, 0, 1, 1], [], []>} : vector<20x20xbf16>, vector<20x8xbf16>, vector<20x8xf32> -> vector<20x8xf32>
    %c0_221 = arith.constant 0 : index
    %c0_222 = arith.constant 0 : index
    %475 = vector.load %arg42[%c0_221, %c0_222] : memref<24x32xf32, #tpu.memory_space<vmem>>, vector<20x8xf32>
    tpu.vector_store %arg42[%c0_221, %c0_222], %474 {strides = array<i32>} : memref<24x32xf32, #tpu.memory_space<vmem>>, vector<20x8xf32>,
    %476 = vector.extract_strided_slice %452 {offsets = [0, 8], sizes = [20, 8], strides = [1, 1]} : vector<20x96xf32> to vector<20x8xf32>
    %477 = vector.extract_strided_slice %452 {offsets = [0, 40], sizes = [20, 8], strides = [1, 1]} : vector<20x96xf32> to vector<20x8xf32>
    %478 = vector.extract_strided_slice %452 {offsets = [0, 72], sizes = [20, 8], strides = [1, 1]} : vector<20x96xf32> to vector<20x8xf32>
    %479 = arith.truncf %476 : vector<20x8xf32> to vector<20x8xbf16>
    %480 = arith.truncf %477 : vector<20x8xf32> to vector<20x8xbf16>
    %cst_223 = arith.constant dense<0.000000e+00> : vector<20x20xf32>
    %481 = tpu.matmul %479, %480, %cst_223 {dimension_numbers = #tpu.dot_dimension_numbers<[1], [1], [0], [0], [0, 0, 1, 0], [], []>} : vector<20x8xbf16>, vector<20x8xbf16>, vector<20x20xf32> -> vector<20x20xf32>
    %cst_224 = arith.constant 0.353553385 : f32
    %482 = vector.broadcast %cst_224 : f32 to vector<20x20xf32>
    %483 = arith.mulf %481, %482 : vector<20x20xf32>
    %484 = arith.addf %483, %2 : vector<20x20xf32>
    %cst_225 = arith.constant dense<0xFF800000> : vector<20xf32>
    %485 = vector.multi_reduction <maximumf>, %484, %cst_225 [1] : vector<20x20xf32> to vector<20xf32>
    %486 = vector.shape_cast %485 : vector<20xf32> to vector<20x1xf32>
    %487 = vector.broadcast %486 : vector<20x1xf32> to vector<20x20xf32>
    %488 = arith.subf %484, %487 : vector<20x20xf32>
    %489 = math.exp %488 : vector<20x20xf32>
    %cst_226 = arith.constant dense<0.000000e+00> : vector<20xf32>
    %490 = vector.multi_reduction <add>, %489, %cst_226 [1] : vector<20x20xf32> to vector<20xf32>
    %491 = vector.shape_cast %490 : vector<20xf32> to vector<20x1xf32>
    %492 = tpu.reciprocal %491 {approx = true} : vector<20x1xf32> -> vector<20x1xf32>
    %493 = vector.broadcast %492 : vector<20x1xf32> to vector<20x20xf32>
    %494 = arith.mulf %489, %493 : vector<20x20xf32>
    %495 = arith.truncf %494 : vector<20x20xf32> to vector<20x20xbf16>
    %496 = arith.truncf %478 : vector<20x8xf32> to vector<20x8xbf16>
    %cst_227 = arith.constant dense<0.000000e+00> : vector<20x8xf32>
    %497 = tpu.matmul %495, %496, %cst_227 {dimension_numbers = #tpu.dot_dimension_numbers<[1], [0], [0], [1], [0, 0, 1, 1], [], []>} : vector<20x20xbf16>, vector<20x8xbf16>, vector<20x8xf32> -> vector<20x8xf32>
    %c0_228 = arith.constant 0 : index
    %c8_229 = arith.constant 8 : index
    %498 = vector.load %arg42[%c0_228, %c8_229] : memref<24x32xf32, #tpu.memory_space<vmem>>, vector<20x8xf32>
    tpu.vector_store %arg42[%c0_228, %c8_229], %497 {strides = array<i32>} : memref<24x32xf32, #tpu.memory_space<vmem>>, vector<20x8xf32>,
    %499 = vector.extract_strided_slice %452 {offsets = [0, 16], sizes = [20, 8], strides = [1, 1]} : vector<20x96xf32> to vector<20x8xf32>
    %500 = vector.extract_strided_slice %452 {offsets = [0, 48], sizes = [20, 8], strides = [1, 1]} : vector<20x96xf32> to vector<20x8xf32>
    %501 = vector.extract_strided_slice %452 {offsets = [0, 80], sizes = [20, 8], strides = [1, 1]} : vector<20x96xf32> to vector<20x8xf32>
    %502 = arith.truncf %499 : vector<20x8xf32> to vector<20x8xbf16>
    %503 = arith.truncf %500 : vector<20x8xf32> to vector<20x8xbf16>
    %cst_230 = arith.constant dense<0.000000e+00> : vector<20x20xf32>
    %504 = tpu.matmul %502, %503, %cst_230 {dimension_numbers = #tpu.dot_dimension_numbers<[1], [1], [0], [0], [0, 0, 1, 0], [], []>} : vector<20x8xbf16>, vector<20x8xbf16>, vector<20x20xf32> -> vector<20x20xf32>
    %cst_231 = arith.constant 0.353553385 : f32
    %505 = vector.broadcast %cst_231 : f32 to vector<20x20xf32>
    %506 = arith.mulf %504, %505 : vector<20x20xf32>
    %507 = arith.addf %506, %2 : vector<20x20xf32>
    %cst_232 = arith.constant dense<0xFF800000> : vector<20xf32>
    %508 = vector.multi_reduction <maximumf>, %507, %cst_232 [1] : vector<20x20xf32> to vector<20xf32>
    %509 = vector.shape_cast %508 : vector<20xf32> to vector<20x1xf32>
    %510 = vector.broadcast %509 : vector<20x1xf32> to vector<20x20xf32>
    %511 = arith.subf %507, %510 : vector<20x20xf32>
    %512 = math.exp %511 : vector<20x20xf32>
    %cst_233 = arith.constant dense<0.000000e+00> : vector<20xf32>
    %513 = vector.multi_reduction <add>, %512, %cst_233 [1] : vector<20x20xf32> to vector<20xf32>
    %514 = vector.shape_cast %513 : vector<20xf32> to vector<20x1xf32>
    %515 = tpu.reciprocal %514 {approx = true} : vector<20x1xf32> -> vector<20x1xf32>
    %516 = vector.broadcast %515 : vector<20x1xf32> to vector<20x20xf32>
    %517 = arith.mulf %512, %516 : vector<20x20xf32>
    %518 = arith.truncf %517 : vector<20x20xf32> to vector<20x20xbf16>
    %519 = arith.truncf %501 : vector<20x8xf32> to vector<20x8xbf16>
    %cst_234 = arith.constant dense<0.000000e+00> : vector<20x8xf32>
    %520 = tpu.matmul %518, %519, %cst_234 {dimension_numbers = #tpu.dot_dimension_numbers<[1], [0], [0], [1], [0, 0, 1, 1], [], []>} : vector<20x20xbf16>, vector<20x8xbf16>, vector<20x8xf32> -> vector<20x8xf32>
    %c0_235 = arith.constant 0 : index
    %c16_236 = arith.constant 16 : index
    %521 = vector.load %arg42[%c0_235, %c16_236] : memref<24x32xf32, #tpu.memory_space<vmem>>, vector<20x8xf32>
    tpu.vector_store %arg42[%c0_235, %c16_236], %520 {strides = array<i32>} : memref<24x32xf32, #tpu.memory_space<vmem>>, vector<20x8xf32>,
    %522 = vector.extract_strided_slice %452 {offsets = [0, 24], sizes = [20, 8], strides = [1, 1]} : vector<20x96xf32> to vector<20x8xf32>
    %523 = vector.extract_strided_slice %452 {offsets = [0, 56], sizes = [20, 8], strides = [1, 1]} : vector<20x96xf32> to vector<20x8xf32>
    %524 = vector.extract_strided_slice %452 {offsets = [0, 88], sizes = [20, 8], strides = [1, 1]} : vector<20x96xf32> to vector<20x8xf32>
    %525 = arith.truncf %522 : vector<20x8xf32> to vector<20x8xbf16>
    %526 = arith.truncf %523 : vector<20x8xf32> to vector<20x8xbf16>
    %cst_237 = arith.constant dense<0.000000e+00> : vector<20x20xf32>
    %527 = tpu.matmul %525, %526, %cst_237 {dimension_numbers = #tpu.dot_dimension_numbers<[1], [1], [0], [0], [0, 0, 1, 0], [], []>} : vector<20x8xbf16>, vector<20x8xbf16>, vector<20x20xf32> -> vector<20x20xf32>
    %cst_238 = arith.constant 0.353553385 : f32
    %528 = vector.broadcast %cst_238 : f32 to vector<20x20xf32>
    %529 = arith.mulf %527, %528 : vector<20x20xf32>
    %530 = arith.addf %529, %2 : vector<20x20xf32>
    %cst_239 = arith.constant dense<0xFF800000> : vector<20xf32>
    %531 = vector.multi_reduction <maximumf>, %530, %cst_239 [1] : vector<20x20xf32> to vector<20xf32>
    %532 = vector.shape_cast %531 : vector<20xf32> to vector<20x1xf32>
    %533 = vector.broadcast %532 : vector<20x1xf32> to vector<20x20xf32>
    %534 = arith.subf %530, %533 : vector<20x20xf32>
    %535 = math.exp %534 : vector<20x20xf32>
    %cst_240 = arith.constant dense<0.000000e+00> : vector<20xf32>
    %536 = vector.multi_reduction <add>, %535, %cst_240 [1] : vector<20x20xf32> to vector<20xf32>
    %537 = vector.shape_cast %536 : vector<20xf32> to vector<20x1xf32>
    %538 = tpu.reciprocal %537 {approx = true} : vector<20x1xf32> -> vector<20x1xf32>
    %539 = vector.broadcast %538 : vector<20x1xf32> to vector<20x20xf32>
    %540 = arith.mulf %535, %539 : vector<20x20xf32>
    %541 = arith.truncf %540 : vector<20x20xf32> to vector<20x20xbf16>
    %542 = arith.truncf %524 : vector<20x8xf32> to vector<20x8xbf16>
    %cst_241 = arith.constant dense<0.000000e+00> : vector<20x8xf32>
    %543 = tpu.matmul %541, %542, %cst_241 {dimension_numbers = #tpu.dot_dimension_numbers<[1], [0], [0], [1], [0, 0, 1, 1], [], []>} : vector<20x20xbf16>, vector<20x8xbf16>, vector<20x8xf32> -> vector<20x8xf32>
    %c0_242 = arith.constant 0 : index
    %c24_243 = arith.constant 24 : index
    %544 = vector.load %arg42[%c0_242, %c24_243] : memref<24x32xf32, #tpu.memory_space<vmem>>, vector<20x8xf32>
    tpu.vector_store %arg42[%c0_242, %c24_243], %543 {strides = array<i32>} : memref<24x32xf32, #tpu.memory_space<vmem>>, vector<20x8xf32>,
    %c0_244 = arith.constant 0 : index
    %c0_245 = arith.constant 0 : index
    %545 = vector.load %arg42[%c0_244, %c0_245] : memref<24x32xf32, #tpu.memory_space<vmem>>, vector<20x32xf32>
    %c0_246 = arith.constant 0 : index
    %c0_247 = arith.constant 0 : index
    %c0_248 = arith.constant 0 : index
    %546 = vector.load %arg30[%c0_246, %c0_247, %c0_248] : memref<2x32x32xbf16, #tpu.memory_space<vmem>>, vector<1x32x32xbf16>
    %547 = vector.shape_cast %546 : vector<1x32x32xbf16> to vector<32x32xbf16>
    %548 = arith.truncf %545 : vector<20x32xf32> to vector<20x32xbf16>
    %cst_249 = arith.constant dense<0.000000e+00> : vector<20x32xf32>
    %549 = tpu.matmul %548, %547, %cst_249 {dimension_numbers = #tpu.dot_dimension_numbers<[1], [0], [0], [1], [0, 0, 1, 1], [], []>} : vector<20x32xbf16>, vector<32x32xbf16>, vector<20x32xf32> -> vector<20x32xf32>
    %c0_250 = arith.constant 0 : index
    %c0_251 = arith.constant 0 : index
    %c0_252 = arith.constant 0 : index
    %550 = vector.load %arg31[%c0_250, %c0_251, %c0_252] : memref<2x1x32xf32, #tpu.memory_space<vmem>>, vector<1x1x32xf32>
    %551 = vector.shape_cast %550 : vector<1x1x32xf32> to vector<1x32xf32>
    %552 = vector.broadcast %551 : vector<1x32xf32> to vector<20x32xf32>
    %553 = arith.addf %549, %552 : vector<20x32xf32>
    %554 = arith.addf %444, %553 : vector<20x32xf32>
    %c0_253 = arith.constant 0 : index
    %c0_254 = arith.constant 0 : index
    %c0_255 = arith.constant 0 : index
    %555 = vector.load %arg36[%c0_253, %c0_254, %c0_255] : memref<2x1x32xf32, #tpu.memory_space<vmem>>, vector<1x1x32xf32>
    %556 = vector.shape_cast %555 : vector<1x1x32xf32> to vector<1x32xf32>
    %c0_256 = arith.constant 0 : index
    %c0_257 = arith.constant 0 : index
    %c0_258 = arith.constant 0 : index
    %557 = vector.load %arg37[%c0_256, %c0_257, %c0_258] : memref<2x1x32xf32, #tpu.memory_space<vmem>>, vector<1x1x32xf32>
    %558 = vector.shape_cast %557 : vector<1x1x32xf32> to vector<1x32xf32>
    %cst_259 = arith.constant dense<0.000000e+00> : vector<20xf32>
    %559 = vector.multi_reduction <add>, %554, %cst_259 [1] : vector<20x32xf32> to vector<20xf32>
    %560 = vector.shape_cast %559 : vector<20xf32> to vector<20x1xf32>
    %cst_260 = arith.constant 3.200000e+01 : f32
    %561 = vector.broadcast %cst_260 : f32 to vector<20x1xf32>
    %562 = arith.divf %560, %561 : vector<20x1xf32>
    %563 = vector.broadcast %562 : vector<20x1xf32> to vector<20x32xf32>
    %564 = arith.subf %554, %563 : vector<20x32xf32>
    %565 = arith.mulf %564, %564 : vector<20x32xf32>
    %cst_261 = arith.constant dense<0.000000e+00> : vector<20xf32>
    %566 = vector.multi_reduction <add>, %565, %cst_261 [1] : vector<20x32xf32> to vector<20xf32>
    %567 = vector.shape_cast %566 : vector<20xf32> to vector<20x1xf32>
    %cst_262 = arith.constant 3.200000e+01 : f32
    %568 = vector.broadcast %cst_262 : f32 to vector<20x1xf32>
    %569 = arith.divf %567, %568 : vector<20x1xf32>
    %cst_263 = arith.constant 9.99999974E-6 : f32
    %570 = vector.broadcast %cst_263 : f32 to vector<20x1xf32>
    %571 = arith.addf %569, %570 : vector<20x1xf32>
    %572 = math.rsqrt %571 : vector<20x1xf32>
    %573 = vector.broadcast %572 : vector<20x1xf32> to vector<20x32xf32>
    %574 = arith.mulf %564, %573 : vector<20x32xf32>
    %575 = vector.broadcast %556 : vector<1x32xf32> to vector<20x32xf32>
    %576 = arith.mulf %574, %575 : vector<20x32xf32>
    %577 = vector.broadcast %558 : vector<1x32xf32> to vector<20x32xf32>
    %578 = arith.addf %576, %577 : vector<20x32xf32>
    %c0_264 = arith.constant 0 : index
    %c0_265 = arith.constant 0 : index
    %c0_266 = arith.constant 0 : index
    %579 = vector.load %arg32[%c0_264, %c0_265, %c0_266] : memref<2x32x64xbf16, #tpu.memory_space<vmem>>, vector<1x32x64xbf16>
    %580 = vector.shape_cast %579 : vector<1x32x64xbf16> to vector<32x64xbf16>
    %581 = arith.truncf %578 : vector<20x32xf32> to vector<20x32xbf16>
    %cst_267 = arith.constant dense<0.000000e+00> : vector<20x64xf32>
    %582 = tpu.matmul %581, %580, %cst_267 {dimension_numbers = #tpu.dot_dimension_numbers<[1], [0], [0], [1], [0, 0, 1, 1], [], []>} : vector<20x32xbf16>, vector<32x64xbf16>, vector<20x64xf32> -> vector<20x64xf32>
    %c0_268 = arith.constant 0 : index
    %c0_269 = arith.constant 0 : index
    %c0_270 = arith.constant 0 : index
    %583 = vector.load %arg33[%c0_268, %c0_269, %c0_270] : memref<2x1x64xf32, #tpu.memory_space<vmem>>, vector<1x1x64xf32>
    %584 = vector.shape_cast %583 : vector<1x1x64xf32> to vector<1x64xf32>
    %585 = vector.broadcast %584 : vector<1x64xf32> to vector<20x64xf32>
    %586 = arith.addf %582, %585 : vector<20x64xf32>
    %587 = arith.mulf %586, %586 : vector<20x64xf32>
    %588 = arith.mulf %586, %587 : vector<20x64xf32>
    %cst_271 = arith.constant 4.471500e-02 : f32
    %589 = vector.broadcast %cst_271 : f32 to vector<20x64xf32>
    %590 = arith.mulf %589, %588 : vector<20x64xf32>
    %591 = arith.addf %586, %590 : vector<20x64xf32>
    %cst_272 = arith.constant 0.797884583 : f32
    %592 = vector.broadcast %cst_272 : f32 to vector<20x64xf32>
    %593 = arith.mulf %592, %591 : vector<20x64xf32>
    %594 = math.tanh %593 : vector<20x64xf32>
    %cst_273 = arith.constant 1.000000e+00 : f32
    %595 = vector.broadcast %cst_273 : f32 to vector<20x64xf32>
    %596 = arith.addf %595, %594 : vector<20x64xf32>
    %cst_274 = arith.constant 5.000000e-01 : f32
    %597 = vector.broadcast %cst_274 : f32 to vector<20x64xf32>
    %598 = arith.mulf %597, %596 : vector<20x64xf32>
    %599 = arith.mulf %586, %598 : vector<20x64xf32>
    %c0_275 = arith.constant 0 : index
    %c0_276 = arith.constant 0 : index
    %c0_277 = arith.constant 0 : index
    %600 = vector.load %arg34[%c0_275, %c0_276, %c0_277] : memref<2x64x32xbf16, #tpu.memory_space<vmem>>, vector<1x64x32xbf16>
    %601 = vector.shape_cast %600 : vector<1x64x32xbf16> to vector<64x32xbf16>
    %602 = arith.truncf %599 : vector<20x64xf32> to vector<20x64xbf16>
    %cst_278 = arith.constant dense<0.000000e+00> : vector<20x32xf32>
    %603 = tpu.matmul %602, %601, %cst_278 {dimension_numbers = #tpu.dot_dimension_numbers<[1], [0], [0], [1], [0, 0, 1, 1], [], []>} : vector<20x64xbf16>, vector<64x32xbf16>, vector<20x32xf32> -> vector<20x32xf32>
    %c0_279 = arith.constant 0 : index
    %c0_280 = arith.constant 0 : index
    %c0_281 = arith.constant 0 : index
    %604 = vector.load %arg35[%c0_279, %c0_280, %c0_281] : memref<2x1x32xf32, #tpu.memory_space<vmem>>, vector<1x1x32xf32>
    %605 = vector.shape_cast %604 : vector<1x1x32xf32> to vector<1x32xf32>
    %606 = vector.broadcast %605 : vector<1x32xf32> to vector<20x32xf32>
    %607 = arith.addf %603, %606 : vector<20x32xf32>
    %608 = arith.addf %578, %607 : vector<20x32xf32>
    %c0_282 = arith.constant 0 : index
    %c0_283 = arith.constant 0 : index
    %c0_284 = arith.constant 0 : index
    %609 = vector.load %arg38[%c0_282, %c0_283, %c0_284] : memref<2x1x32xf32, #tpu.memory_space<vmem>>, vector<1x1x32xf32>
    %610 = vector.shape_cast %609 : vector<1x1x32xf32> to vector<1x32xf32>
    %c0_285 = arith.constant 0 : index
    %c0_286 = arith.constant 0 : index
    %c0_287 = arith.constant 0 : index
    %611 = vector.load %arg39[%c0_285, %c0_286, %c0_287] : memref<2x1x32xf32, #tpu.memory_space<vmem>>, vector<1x1x32xf32>
    %612 = vector.shape_cast %611 : vector<1x1x32xf32> to vector<1x32xf32>
    %cst_288 = arith.constant dense<0.000000e+00> : vector<20xf32>
    %613 = vector.multi_reduction <add>, %608, %cst_288 [1] : vector<20x32xf32> to vector<20xf32>
    %614 = vector.shape_cast %613 : vector<20xf32> to vector<20x1xf32>
    %cst_289 = arith.constant 3.200000e+01 : f32
    %615 = vector.broadcast %cst_289 : f32 to vector<20x1xf32>
    %616 = arith.divf %614, %615 : vector<20x1xf32>
    %617 = vector.broadcast %616 : vector<20x1xf32> to vector<20x32xf32>
    %618 = arith.subf %608, %617 : vector<20x32xf32>
    %619 = arith.mulf %618, %618 : vector<20x32xf32>
    %cst_290 = arith.constant dense<0.000000e+00> : vector<20xf32>
    %620 = vector.multi_reduction <add>, %619, %cst_290 [1] : vector<20x32xf32> to vector<20xf32>
    %621 = vector.shape_cast %620 : vector<20xf32> to vector<20x1xf32>
    %cst_291 = arith.constant 3.200000e+01 : f32
    %622 = vector.broadcast %cst_291 : f32 to vector<20x1xf32>
    %623 = arith.divf %621, %622 : vector<20x1xf32>
    %cst_292 = arith.constant 9.99999974E-6 : f32
    %624 = vector.broadcast %cst_292 : f32 to vector<20x1xf32>
    %625 = arith.addf %623, %624 : vector<20x1xf32>
    %626 = math.rsqrt %625 : vector<20x1xf32>
    %627 = vector.broadcast %626 : vector<20x1xf32> to vector<20x32xf32>
    %628 = arith.mulf %618, %627 : vector<20x32xf32>
    %629 = vector.broadcast %610 : vector<1x32xf32> to vector<20x32xf32>
    %630 = arith.mulf %628, %629 : vector<20x32xf32>
    %631 = vector.broadcast %612 : vector<1x32xf32> to vector<20x32xf32>
    %632 = arith.addf %630, %631 : vector<20x32xf32>
    %c1_293 = arith.constant 1 : index
    %c0_294 = arith.constant 0 : index
    %c0_295 = arith.constant 0 : index
    %633 = vector.load %arg28[%c1_293, %c0_294, %c0_295] : memref<2x32x96xbf16, #tpu.memory_space<vmem>>, vector<1x32x96xbf16>
    %634 = vector.shape_cast %633 : vector<1x32x96xbf16> to vector<32x96xbf16>
    %635 = arith.truncf %632 : vector<20x32xf32> to vector<20x32xbf16>
    %cst_296 = arith.constant dense<0.000000e+00> : vector<20x96xf32>
    %636 = tpu.matmul %635, %634, %cst_296 {dimension_numbers = #tpu.dot_dimension_numbers<[1], [0], [0], [1], [0, 0, 1, 1], [], []>} : vector<20x32xbf16>, vector<32x96xbf16>, vector<20x96xf32> -> vector<20x96xf32>
    %c1_297 = arith.constant 1 : index
    %c0_298 = arith.constant 0 : index
    %c0_299 = arith.constant 0 : index
    %637 = vector.load %arg29[%c1_297, %c0_298, %c0_299] : memref<2x1x96xf32, #tpu.memory_space<vmem>>, vector<1x1x96xf32>
    %638 = vector.shape_cast %637 : vector<1x1x96xf32> to vector<1x96xf32>
    %639 = vector.broadcast %638 : vector<1x96xf32> to vector<20x96xf32>
    %640 = arith.addf %636, %639 : vector<20x96xf32>
    %641 = vector.extract_strided_slice %640 {offsets = [0, 0], sizes = [20, 8], strides = [1, 1]} : vector<20x96xf32> to vector<20x8xf32>
    %642 = vector.extract_strided_slice %640 {offsets = [0, 32], sizes = [20, 8], strides = [1, 1]} : vector<20x96xf32> to vector<20x8xf32>
    %643 = vector.extract_strided_slice %640 {offsets = [0, 64], sizes = [20, 8], strides = [1, 1]} : vector<20x96xf32> to vector<20x8xf32>
    %644 = arith.truncf %641 : vector<20x8xf32> to vector<20x8xbf16>
    %645 = arith.truncf %642 : vector<20x8xf32> to vector<20x8xbf16>
    %cst_300 = arith.constant dense<0.000000e+00> : vector<20x20xf32>
    %646 = tpu.matmul %644, %645, %cst_300 {dimension_numbers = #tpu.dot_dimension_numbers<[1], [1], [0], [0], [0, 0, 1, 0], [], []>} : vector<20x8xbf16>, vector<20x8xbf16>, vector<20x20xf32> -> vector<20x20xf32>
    %cst_301 = arith.constant 0.353553385 : f32
    %647 = vector.broadcast %cst_301 : f32 to vector<20x20xf32>
    %648 = arith.mulf %646, %647 : vector<20x20xf32>
    %649 = arith.addf %648, %2 : vector<20x20xf32>
    %cst_302 = arith.constant dense<0xFF800000> : vector<20xf32>
    %650 = vector.multi_reduction <maximumf>, %649, %cst_302 [1] : vector<20x20xf32> to vector<20xf32>
    %651 = vector.shape_cast %650 : vector<20xf32> to vector<20x1xf32>
    %652 = vector.broadcast %651 : vector<20x1xf32> to vector<20x20xf32>
    %653 = arith.subf %649, %652 : vector<20x20xf32>
    %654 = math.exp %653 : vector<20x20xf32>
    %cst_303 = arith.constant dense<0.000000e+00> : vector<20xf32>
    %655 = vector.multi_reduction <add>, %654, %cst_303 [1] : vector<20x20xf32> to vector<20xf32>
    %656 = vector.shape_cast %655 : vector<20xf32> to vector<20x1xf32>
    %657 = tpu.reciprocal %656 {approx = true} : vector<20x1xf32> -> vector<20x1xf32>
    %658 = vector.broadcast %657 : vector<20x1xf32> to vector<20x20xf32>
    %659 = arith.mulf %654, %658 : vector<20x20xf32>
    %660 = arith.truncf %659 : vector<20x20xf32> to vector<20x20xbf16>
    %661 = arith.truncf %643 : vector<20x8xf32> to vector<20x8xbf16>
    %cst_304 = arith.constant dense<0.000000e+00> : vector<20x8xf32>
    %662 = tpu.matmul %660, %661, %cst_304 {dimension_numbers = #tpu.dot_dimension_numbers<[1], [0], [0], [1], [0, 0, 1, 1], [], []>} : vector<20x20xbf16>, vector<20x8xbf16>, vector<20x8xf32> -> vector<20x8xf32>
    %c0_305 = arith.constant 0 : index
    %c0_306 = arith.constant 0 : index
    %663 = vector.load %arg42[%c0_305, %c0_306] : memref<24x32xf32, #tpu.memory_space<vmem>>, vector<20x8xf32>
    tpu.vector_store %arg42[%c0_305, %c0_306], %662 {strides = array<i32>} : memref<24x32xf32, #tpu.memory_space<vmem>>, vector<20x8xf32>,
    %664 = vector.extract_strided_slice %640 {offsets = [0, 8], sizes = [20, 8], strides = [1, 1]} : vector<20x96xf32> to vector<20x8xf32>
    %665 = vector.extract_strided_slice %640 {offsets = [0, 40], sizes = [20, 8], strides = [1, 1]} : vector<20x96xf32> to vector<20x8xf32>
    %666 = vector.extract_strided_slice %640 {offsets = [0, 72], sizes = [20, 8], strides = [1, 1]} : vector<20x96xf32> to vector<20x8xf32>
    %667 = arith.truncf %664 : vector<20x8xf32> to vector<20x8xbf16>
    %668 = arith.truncf %665 : vector<20x8xf32> to vector<20x8xbf16>
    %cst_307 = arith.constant dense<0.000000e+00> : vector<20x20xf32>
    %669 = tpu.matmul %667, %668, %cst_307 {dimension_numbers = #tpu.dot_dimension_numbers<[1], [1], [0], [0], [0, 0, 1, 0], [], []>} : vector<20x8xbf16>, vector<20x8xbf16>, vector<20x20xf32> -> vector<20x20xf32>
    %cst_308 = arith.constant 0.353553385 : f32
    %670 = vector.broadcast %cst_308 : f32 to vector<20x20xf32>
    %671 = arith.mulf %669, %670 : vector<20x20xf32>
    %672 = arith.addf %671, %2 : vector<20x20xf32>
    %cst_309 = arith.constant dense<0xFF800000> : vector<20xf32>
    %673 = vector.multi_reduction <maximumf>, %672, %cst_309 [1] : vector<20x20xf32> to vector<20xf32>
    %674 = vector.shape_cast %673 : vector<20xf32> to vector<20x1xf32>
    %675 = vector.broadcast %674 : vector<20x1xf32> to vector<20x20xf32>
    %676 = arith.subf %672, %675 : vector<20x20xf32>
    %677 = math.exp %676 : vector<20x20xf32>
    %cst_310 = arith.constant dense<0.000000e+00> : vector<20xf32>
    %678 = vector.multi_reduction <add>, %677, %cst_310 [1] : vector<20x20xf32> to vector<20xf32>
    %679 = vector.shape_cast %678 : vector<20xf32> to vector<20x1xf32>
    %680 = tpu.reciprocal %679 {approx = true} : vector<20x1xf32> -> vector<20x1xf32>
    %681 = vector.broadcast %680 : vector<20x1xf32> to vector<20x20xf32>
    %682 = arith.mulf %677, %681 : vector<20x20xf32>
    %683 = arith.truncf %682 : vector<20x20xf32> to vector<20x20xbf16>
    %684 = arith.truncf %666 : vector<20x8xf32> to vector<20x8xbf16>
    %cst_311 = arith.constant dense<0.000000e+00> : vector<20x8xf32>
    %685 = tpu.matmul %683, %684, %cst_311 {dimension_numbers = #tpu.dot_dimension_numbers<[1], [0], [0], [1], [0, 0, 1, 1], [], []>} : vector<20x20xbf16>, vector<20x8xbf16>, vector<20x8xf32> -> vector<20x8xf32>
    %c0_312 = arith.constant 0 : index
    %c8_313 = arith.constant 8 : index
    %686 = vector.load %arg42[%c0_312, %c8_313] : memref<24x32xf32, #tpu.memory_space<vmem>>, vector<20x8xf32>
    tpu.vector_store %arg42[%c0_312, %c8_313], %685 {strides = array<i32>} : memref<24x32xf32, #tpu.memory_space<vmem>>, vector<20x8xf32>,
    %687 = vector.extract_strided_slice %640 {offsets = [0, 16], sizes = [20, 8], strides = [1, 1]} : vector<20x96xf32> to vector<20x8xf32>
    %688 = vector.extract_strided_slice %640 {offsets = [0, 48], sizes = [20, 8], strides = [1, 1]} : vector<20x96xf32> to vector<20x8xf32>
    %689 = vector.extract_strided_slice %640 {offsets = [0, 80], sizes = [20, 8], strides = [1, 1]} : vector<20x96xf32> to vector<20x8xf32>
    %690 = arith.truncf %687 : vector<20x8xf32> to vector<20x8xbf16>
    %691 = arith.truncf %688 : vector<20x8xf32> to vector<20x8xbf16>
    %cst_314 = arith.constant dense<0.000000e+00> : vector<20x20xf32>
    %692 = tpu.matmul %690, %691, %cst_314 {dimension_numbers = #tpu.dot_dimension_numbers<[1], [1], [0], [0], [0, 0, 1, 0], [], []>} : vector<20x8xbf16>, vector<20x8xbf16>, vector<20x20xf32> -> vector<20x20xf32>
    %cst_315 = arith.constant 0.353553385 : f32
    %693 = vector.broadcast %cst_315 : f32 to vector<20x20xf32>
    %694 = arith.mulf %692, %693 : vector<20x20xf32>
    %695 = arith.addf %694, %2 : vector<20x20xf32>
    %cst_316 = arith.constant dense<0xFF800000> : vector<20xf32>
    %696 = vector.multi_reduction <maximumf>, %695, %cst_316 [1] : vector<20x20xf32> to vector<20xf32>
    %697 = vector.shape_cast %696 : vector<20xf32> to vector<20x1xf32>
    %698 = vector.broadcast %697 : vector<20x1xf32> to vector<20x20xf32>
    %699 = arith.subf %695, %698 : vector<20x20xf32>
    %700 = math.exp %699 : vector<20x20xf32>
    %cst_317 = arith.constant dense<0.000000e+00> : vector<20xf32>
    %701 = vector.multi_reduction <add>, %700, %cst_317 [1] : vector<20x20xf32> to vector<20xf32>
    %702 = vector.shape_cast %701 : vector<20xf32> to vector<20x1xf32>
    %703 = tpu.reciprocal %702 {approx = true} : vector<20x1xf32> -> vector<20x1xf32>
    %704 = vector.broadcast %703 : vector<20x1xf32> to vector<20x20xf32>
    %705 = arith.mulf %700, %704 : vector<20x20xf32>
    %706 = arith.truncf %705 : vector<20x20xf32> to vector<20x20xbf16>
    %707 = arith.truncf %689 : vector<20x8xf32> to vector<20x8xbf16>
    %cst_318 = arith.constant dense<0.000000e+00> : vector<20x8xf32>
    %708 = tpu.matmul %706, %707, %cst_318 {dimension_numbers = #tpu.dot_dimension_numbers<[1], [0], [0], [1], [0, 0, 1, 1], [], []>} : vector<20x20xbf16>, vector<20x8xbf16>, vector<20x8xf32> -> vector<20x8xf32>
    %c0_319 = arith.constant 0 : index
    %c16_320 = arith.constant 16 : index
    %709 = vector.load %arg42[%c0_319, %c16_320] : memref<24x32xf32, #tpu.memory_space<vmem>>, vector<20x8xf32>
    tpu.vector_store %arg42[%c0_319, %c16_320], %708 {strides = array<i32>} : memref<24x32xf32, #tpu.memory_space<vmem>>, vector<20x8xf32>,
    %710 = vector.extract_strided_slice %640 {offsets = [0, 24], sizes = [20, 8], strides = [1, 1]} : vector<20x96xf32> to vector<20x8xf32>
    %711 = vector.extract_strided_slice %640 {offsets = [0, 56], sizes = [20, 8], strides = [1, 1]} : vector<20x96xf32> to vector<20x8xf32>
    %712 = vector.extract_strided_slice %640 {offsets = [0, 88], sizes = [20, 8], strides = [1, 1]} : vector<20x96xf32> to vector<20x8xf32>
    %713 = arith.truncf %710 : vector<20x8xf32> to vector<20x8xbf16>
    %714 = arith.truncf %711 : vector<20x8xf32> to vector<20x8xbf16>
    %cst_321 = arith.constant dense<0.000000e+00> : vector<20x20xf32>
    %715 = tpu.matmul %713, %714, %cst_321 {dimension_numbers = #tpu.dot_dimension_numbers<[1], [1], [0], [0], [0, 0, 1, 0], [], []>} : vector<20x8xbf16>, vector<20x8xbf16>, vector<20x20xf32> -> vector<20x20xf32>
    %cst_322 = arith.constant 0.353553385 : f32
    %716 = vector.broadcast %cst_322 : f32 to vector<20x20xf32>
    %717 = arith.mulf %715, %716 : vector<20x20xf32>
    %718 = arith.addf %717, %2 : vector<20x20xf32>
    %cst_323 = arith.constant dense<0xFF800000> : vector<20xf32>
    %719 = vector.multi_reduction <maximumf>, %718, %cst_323 [1] : vector<20x20xf32> to vector<20xf32>
    %720 = vector.shape_cast %719 : vector<20xf32> to vector<20x1xf32>
    %721 = vector.broadcast %720 : vector<20x1xf32> to vector<20x20xf32>
    %722 = arith.subf %718, %721 : vector<20x20xf32>
    %723 = math.exp %722 : vector<20x20xf32>
    %cst_324 = arith.constant dense<0.000000e+00> : vector<20xf32>
    %724 = vector.multi_reduction <add>, %723, %cst_324 [1] : vector<20x20xf32> to vector<20xf32>
    %725 = vector.shape_cast %724 : vector<20xf32> to vector<20x1xf32>
    %726 = tpu.reciprocal %725 {approx = true} : vector<20x1xf32> -> vector<20x1xf32>
    %727 = vector.broadcast %726 : vector<20x1xf32> to vector<20x20xf32>
    %728 = arith.mulf %723, %727 : vector<20x20xf32>
    %729 = arith.truncf %728 : vector<20x20xf32> to vector<20x20xbf16>
    %730 = arith.truncf %712 : vector<20x8xf32> to vector<20x8xbf16>
    %cst_325 = arith.constant dense<0.000000e+00> : vector<20x8xf32>
    %731 = tpu.matmul %729, %730, %cst_325 {dimension_numbers = #tpu.dot_dimension_numbers<[1], [0], [0], [1], [0, 0, 1, 1], [], []>} : vector<20x20xbf16>, vector<20x8xbf16>, vector<20x8xf32> -> vector<20x8xf32>
    %c0_326 = arith.constant 0 : index
    %c24_327 = arith.constant 24 : index
    %732 = vector.load %arg42[%c0_326, %c24_327] : memref<24x32xf32, #tpu.memory_space<vmem>>, vector<20x8xf32>
    tpu.vector_store %arg42[%c0_326, %c24_327], %731 {strides = array<i32>} : memref<24x32xf32, #tpu.memory_space<vmem>>, vector<20x8xf32>,
    %c0_328 = arith.constant 0 : index
    %c0_329 = arith.constant 0 : index
    %733 = vector.load %arg42[%c0_328, %c0_329] : memref<24x32xf32, #tpu.memory_space<vmem>>, vector<20x32xf32>
    %c1_330 = arith.constant 1 : index
    %c0_331 = arith.constant 0 : index
    %c0_332 = arith.constant 0 : index
    %734 = vector.load %arg30[%c1_330, %c0_331, %c0_332] : memref<2x32x32xbf16, #tpu.memory_space<vmem>>, vector<1x32x32xbf16>
    %735 = vector.shape_cast %734 : vector<1x32x32xbf16> to vector<32x32xbf16>
    %736 = arith.truncf %733 : vector<20x32xf32> to vector<20x32xbf16>
    %cst_333 = arith.constant dense<0.000000e+00> : vector<20x32xf32>
    %737 = tpu.matmul %736, %735, %cst_333 {dimension_numbers = #tpu.dot_dimension_numbers<[1], [0], [0], [1], [0, 0, 1, 1], [], []>} : vector<20x32xbf16>, vector<32x32xbf16>, vector<20x32xf32> -> vector<20x32xf32>
    %c1_334 = arith.constant 1 : index
    %c0_335 = arith.constant 0 : index
    %c0_336 = arith.constant 0 : index
    %738 = vector.load %arg31[%c1_334, %c0_335, %c0_336] : memref<2x1x32xf32, #tpu.memory_space<vmem>>, vector<1x1x32xf32>
    %739 = vector.shape_cast %738 : vector<1x1x32xf32> to vector<1x32xf32>
    %740 = vector.broadcast %739 : vector<1x32xf32> to vector<20x32xf32>
    %741 = arith.addf %737, %740 : vector<20x32xf32>
    %742 = arith.addf %632, %741 : vector<20x32xf32>
    %c1_337 = arith.constant 1 : index
    %c0_338 = arith.constant 0 : index
    %c0_339 = arith.constant 0 : index
    %743 = vector.load %arg36[%c1_337, %c0_338, %c0_339] : memref<2x1x32xf32, #tpu.memory_space<vmem>>, vector<1x1x32xf32>
    %744 = vector.shape_cast %743 : vector<1x1x32xf32> to vector<1x32xf32>
    %c1_340 = arith.constant 1 : index
    %c0_341 = arith.constant 0 : index
    %c0_342 = arith.constant 0 : index
    %745 = vector.load %arg37[%c1_340, %c0_341, %c0_342] : memref<2x1x32xf32, #tpu.memory_space<vmem>>, vector<1x1x32xf32>
    %746 = vector.shape_cast %745 : vector<1x1x32xf32> to vector<1x32xf32>
    %cst_343 = arith.constant dense<0.000000e+00> : vector<20xf32>
    %747 = vector.multi_reduction <add>, %742, %cst_343 [1] : vector<20x32xf32> to vector<20xf32>
    %748 = vector.shape_cast %747 : vector<20xf32> to vector<20x1xf32>
    %cst_344 = arith.constant 3.200000e+01 : f32
    %749 = vector.broadcast %cst_344 : f32 to vector<20x1xf32>
    %750 = arith.divf %748, %749 : vector<20x1xf32>
    %751 = vector.broadcast %750 : vector<20x1xf32> to vector<20x32xf32>
    %752 = arith.subf %742, %751 : vector<20x32xf32>
    %753 = arith.mulf %752, %752 : vector<20x32xf32>
    %cst_345 = arith.constant dense<0.000000e+00> : vector<20xf32>
    %754 = vector.multi_reduction <add>, %753, %cst_345 [1] : vector<20x32xf32> to vector<20xf32>
    %755 = vector.shape_cast %754 : vector<20xf32> to vector<20x1xf32>
    %cst_346 = arith.constant 3.200000e+01 : f32
    %756 = vector.broadcast %cst_346 : f32 to vector<20x1xf32>
    %757 = arith.divf %755, %756 : vector<20x1xf32>
    %cst_347 = arith.constant 9.99999974E-6 : f32
    %758 = vector.broadcast %cst_347 : f32 to vector<20x1xf32>
    %759 = arith.addf %757, %758 : vector<20x1xf32>
    %760 = math.rsqrt %759 : vector<20x1xf32>
    %761 = vector.broadcast %760 : vector<20x1xf32> to vector<20x32xf32>
    %762 = arith.mulf %752, %761 : vector<20x32xf32>
    %763 = vector.broadcast %744 : vector<1x32xf32> to vector<20x32xf32>
    %764 = arith.mulf %762, %763 : vector<20x32xf32>
    %765 = vector.broadcast %746 : vector<1x32xf32> to vector<20x32xf32>
    %766 = arith.addf %764, %765 : vector<20x32xf32>
    %c1_348 = arith.constant 1 : index
    %c0_349 = arith.constant 0 : index
    %c0_350 = arith.constant 0 : index
    %767 = vector.load %arg32[%c1_348, %c0_349, %c0_350] : memref<2x32x64xbf16, #tpu.memory_space<vmem>>, vector<1x32x64xbf16>
    %768 = vector.shape_cast %767 : vector<1x32x64xbf16> to vector<32x64xbf16>
    %769 = arith.truncf %766 : vector<20x32xf32> to vector<20x32xbf16>
    %cst_351 = arith.constant dense<0.000000e+00> : vector<20x64xf32>
    %770 = tpu.matmul %769, %768, %cst_351 {dimension_numbers = #tpu.dot_dimension_numbers<[1], [0], [0], [1], [0, 0, 1, 1], [], []>} : vector<20x32xbf16>, vector<32x64xbf16>, vector<20x64xf32> -> vector<20x64xf32>
    %c1_352 = arith.constant 1 : index
    %c0_353 = arith.constant 0 : index
    %c0_354 = arith.constant 0 : index
    %771 = vector.load %arg33[%c1_352, %c0_353, %c0_354] : memref<2x1x64xf32, #tpu.memory_space<vmem>>, vector<1x1x64xf32>
    %772 = vector.shape_cast %771 : vector<1x1x64xf32> to vector<1x64xf32>
    %773 = vector.broadcast %772 : vector<1x64xf32> to vector<20x64xf32>
    %774 = arith.addf %770, %773 : vector<20x64xf32>
    %775 = arith.mulf %774, %774 : vector<20x64xf32>
    %776 = arith.mulf %774, %775 : vector<20x64xf32>
    %cst_355 = arith.constant 4.471500e-02 : f32
    %777 = vector.broadcast %cst_355 : f32 to vector<20x64xf32>
    %778 = arith.mulf %777, %776 : vector<20x64xf32>
    %779 = arith.addf %774, %778 : vector<20x64xf32>
    %cst_356 = arith.constant 0.797884583 : f32
    %780 = vector.broadcast %cst_356 : f32 to vector<20x64xf32>
    %781 = arith.mulf %780, %779 : vector<20x64xf32>
    %782 = math.tanh %781 : vector<20x64xf32>
    %cst_357 = arith.constant 1.000000e+00 : f32
    %783 = vector.broadcast %cst_357 : f32 to vector<20x64xf32>
    %784 = arith.addf %783, %782 : vector<20x64xf32>
    %cst_358 = arith.constant 5.000000e-01 : f32
    %785 = vector.broadcast %cst_358 : f32 to vector<20x64xf32>
    %786 = arith.mulf %785, %784 : vector<20x64xf32>
    %787 = arith.mulf %774, %786 : vector<20x64xf32>
    %c1_359 = arith.constant 1 : index
    %c0_360 = arith.constant 0 : index
    %c0_361 = arith.constant 0 : index
    %788 = vector.load %arg34[%c1_359, %c0_360, %c0_361] : memref<2x64x32xbf16, #tpu.memory_space<vmem>>, vector<1x64x32xbf16>
    %789 = vector.shape_cast %788 : vector<1x64x32xbf16> to vector<64x32xbf16>
    %790 = arith.truncf %787 : vector<20x64xf32> to vector<20x64xbf16>
    %cst_362 = arith.constant dense<0.000000e+00> : vector<20x32xf32>
    %791 = tpu.matmul %790, %789, %cst_362 {dimension_numbers = #tpu.dot_dimension_numbers<[1], [0], [0], [1], [0, 0, 1, 1], [], []>} : vector<20x64xbf16>, vector<64x32xbf16>, vector<20x32xf32> -> vector<20x32xf32>
    %c1_363 = arith.constant 1 : index
    %c0_364 = arith.constant 0 : index
    %c0_365 = arith.constant 0 : index
    %792 = vector.load %arg35[%c1_363, %c0_364, %c0_365] : memref<2x1x32xf32, #tpu.memory_space<vmem>>, vector<1x1x32xf32>
    %793 = vector.shape_cast %792 : vector<1x1x32xf32> to vector<1x32xf32>
    %794 = vector.broadcast %793 : vector<1x32xf32> to vector<20x32xf32>
    %795 = arith.addf %791, %794 : vector<20x32xf32>
    %796 = arith.addf %766, %795 : vector<20x32xf32>
    %c1_366 = arith.constant 1 : index
    %c0_367 = arith.constant 0 : index
    %c0_368 = arith.constant 0 : index
    %797 = vector.load %arg38[%c1_366, %c0_367, %c0_368] : memref<2x1x32xf32, #tpu.memory_space<vmem>>, vector<1x1x32xf32>
    %798 = vector.shape_cast %797 : vector<1x1x32xf32> to vector<1x32xf32>
    %c1_369 = arith.constant 1 : index
    %c0_370 = arith.constant 0 : index
    %c0_371 = arith.constant 0 : index
    %799 = vector.load %arg39[%c1_369, %c0_370, %c0_371] : memref<2x1x32xf32, #tpu.memory_space<vmem>>, vector<1x1x32xf32>
    %800 = vector.shape_cast %799 : vector<1x1x32xf32> to vector<1x32xf32>
    %cst_372 = arith.constant dense<0.000000e+00> : vector<20xf32>
    %801 = vector.multi_reduction <add>, %796, %cst_372 [1] : vector<20x32xf32> to vector<20xf32>
    %802 = vector.shape_cast %801 : vector<20xf32> to vector<20x1xf32>
    %cst_373 = arith.constant 3.200000e+01 : f32
    %803 = vector.broadcast %cst_373 : f32 to vector<20x1xf32>
    %804 = arith.divf %802, %803 : vector<20x1xf32>
    %805 = vector.broadcast %804 : vector<20x1xf32> to vector<20x32xf32>
    %806 = arith.subf %796, %805 : vector<20x32xf32>
    %807 = arith.mulf %806, %806 : vector<20x32xf32>
    %cst_374 = arith.constant dense<0.000000e+00> : vector<20xf32>
    %808 = vector.multi_reduction <add>, %807, %cst_374 [1] : vector<20x32xf32> to vector<20xf32>
    %809 = vector.shape_cast %808 : vector<20xf32> to vector<20x1xf32>
    %cst_375 = arith.constant 3.200000e+01 : f32
    %810 = vector.broadcast %cst_375 : f32 to vector<20x1xf32>
    %811 = arith.divf %809, %810 : vector<20x1xf32>
    %cst_376 = arith.constant 9.99999974E-6 : f32
    %812 = vector.broadcast %cst_376 : f32 to vector<20x1xf32>
    %813 = arith.addf %811, %812 : vector<20x1xf32>
    %814 = math.rsqrt %813 : vector<20x1xf32>
    %815 = vector.broadcast %814 : vector<20x1xf32> to vector<20x32xf32>
    %816 = arith.mulf %806, %815 : vector<20x32xf32>
    %817 = vector.broadcast %798 : vector<1x32xf32> to vector<20x32xf32>
    %818 = arith.mulf %816, %817 : vector<20x32xf32>
    %819 = vector.broadcast %800 : vector<1x32xf32> to vector<20x32xf32>
    %820 = arith.addf %818, %819 : vector<20x32xf32>
    %c0_377 = arith.constant 0 : index
    %c0_378 = arith.constant 0 : index
    %821 = vector.load %arg14[%c0_377, %c0_378] : memref<32x128xbf16, #tpu.memory_space<vmem>>, vector<32x128xbf16>
    %822 = arith.truncf %820 : vector<20x32xf32> to vector<20x32xbf16>
    %cst_379 = arith.constant dense<0.000000e+00> : vector<20x128xf32>
    %823 = tpu.matmul %822, %821, %cst_379 {dimension_numbers = #tpu.dot_dimension_numbers<[1], [0], [0], [1], [0, 0, 1, 1], [], []>} : vector<20x32xbf16>, vector<32x128xbf16>, vector<20x128xf32> -> vector<20x128xf32>
    %c0_380 = arith.constant 0 : index
    %c0_381 = arith.constant 0 : index
    %824 = vector.load %arg15[%c0_380, %c0_381] : memref<1x128xf32, #tpu.memory_space<vmem>>, vector<1x128xf32>
    %825 = vector.broadcast %824 : vector<1x128xf32> to vector<20x128xf32>
    %826 = arith.addf %823, %825 : vector<20x128xf32>
    %c0_382 = arith.constant 0 : index
    %c0_383 = arith.constant 0 : index
    %827 = vector.load %arg40[%c0_382, %c0_383] : memref<20x128xf32, #tpu.memory_space<vmem>>, vector<20x128xf32>
    tpu.vector_store %arg40[%c0_382, %c0_383], %826 {strides = array<i32>} : memref<20x128xf32, #tpu.memory_space<vmem>>, vector<20x128xf32>,
    return
  }
}

</mosaic_0001>

<bundles_post_ra>
// kernel: squeeze.3
= control target key start
LH: loop header
LB: loop body
LE: loop exit
PB: predicated region body
PF: predicated region fallthrough
CT: control target
= control target key end

     0   :  { %vm78_vm0 = vcmask 1047556   ;;  %vm86_vm1 = vcmask 1046532   ;;  %vm80_vm2 = vcmask 97280   ;;  %vm99_vm3 = vcmask 195680   ;;  %s214_s0 = inlined_call_operand.vmem [shape: f32[2,12,1,5,3], index: 0, kind: input, shape index: {}]   ;;  %s215_s1 = inlined_call_operand.vmem [shape: f32[24,15], index: 1, kind: output, shape index: {}]  }
   0x1   :  { %v132_v0 = vld [vmem:[%s214_s0 + $0xe] sm:$0x3]  ;;  %v133_v1 = vld [vmem:[%s214_s0 + $0xc] sm:$0x3]  ;;  %v134_v2 = vld [vmem:[%s214_s0 + $0xa] sm:$0x3] }
   0x2   :  { %44 = vst [vmem:[#allocation0 + $0x38] sm:$0x3] %v132_v0  ;;  %49 = vst [vmem:[#allocation0 + $0x30] sm:$0x3] %v133_v1  ;;  %v135_v3 = vld [vmem:[%s214_s0 + $0x8] sm:$0x3] }
   0x3   :  { %54 = vst [vmem:[#allocation0 + $0x28] sm:$0x3] %v134_v2  ;;  %v136_v4 = vld [vmem:[%s214_s0 + $0x6] sm:$0x3]  ;;  %v137_v5 = vld [vmem:[%s214_s0 + $0x4] sm:$0x3] }
   0x4   :  { %59 = vst [vmem:[#allocation0 + $0x20] sm:$0x3] %v135_v3  ;;  %64 = vst [vmem:[#allocation0 + $0x18] sm:$0x3] %v136_v4  ;;  %v138_v6 = vld [vmem:[%s214_s0 + $0x2] sm:$0x3] }
   0x5   :  { %69 = vst [vmem:[#allocation0 + $0x10] sm:$0x3] %v137_v5  ;;  %v74_v7 = vld [vmem:[%s214_s0] sm:$0x3]  ;;  %73 = vst [vmem:[#allocation0 + $0x8] sm:$0x3] %v138_v6 }
   0x6   :  { %75 = vst [vmem:[#allocation0] sm:$0x3] %v74_v7  ;;  %v125_v8 = vld [vmem:[%s214_s0 + $0x1c] sm:$0x3]  ;;  %v126_v9 = vld [vmem:[%s214_s0 + $0x1a] sm:$0x3] }
   0x7   :  { %v127_v10 = vld [vmem:[%s214_s0 + $0x18] sm:$0x3]  ;;  %9 = vst [vmem:[#allocation0 + $0x70] sm:$0x3] %v125_v8  ;;  %14 = vst [vmem:[#allocation0 + $0x68] sm:$0x3] %v126_v9 }
   0x8   :  { %19 = vst [vmem:[#allocation0 + $0x60] sm:$0x3] %v127_v10  ;;  %v128_v11 = vld [vmem:[%s214_s0 + $0x16] sm:$0x3]  ;;  %v129_v12 = vld [vmem:[%s214_s0 + $0x14] sm:$0x3] }
   0x9   :  { %v130_v13 = vld [vmem:[%s214_s0 + $0x12] sm:$0x3]  ;;  %24 = vst [vmem:[#allocation0 + $0x58] sm:$0x3] %v128_v11  ;;  %29 = vst [vmem:[#allocation0 + $0x50] sm:$0x3] %v129_v12 }
   0xa   :  { %34 = vst [vmem:[#allocation0 + $0x48] sm:$0x3] %v130_v13  ;;  %v131_v14 = vld [vmem:[%s214_s0 + $0x10] sm:$0x3]  ;;  %s142_s0 = smov 12  }
   0xb   :  { %39 = vst [vmem:[#allocation0 + $0x40] sm:$0x3] %v131_v14  ;;  %v94_v15 = vld [vmem:[#allocation0 + $0x1] ss:$8 sm:$0xf0]  }
   0xc   :  { %v77_v16 = vld [vmem:[#allocation0] ss:$8 sm:$0xf0]  }
   0xd   :  { %v76_v17 = vld [vmem:[#allocation0] ss:$8 sm:$0xf]   ;;  %v92_v18 = vld [vmem:[#allocation0 + $0x1] ss:$8 sm:$0xf]  }
   0xe   :  { %v96_v19 = vsel %vm78_vm0, %v94_v15, %v92_v18  ;;  %v79_v20 = vsel %vm78_vm0, %v77_v16, %v76_v17 }
   0xf   :  { %v104_v21 = vld [vmem:[#allocation0 + $0x41] ss:$8 sm:$0x70]   ;;  %v85_v22 = vld [vmem:[#allocation0 + $0x40] ss:$8 sm:$0x70]   ;;  %97 = vrot.lane.b32.xlu0 %v96_v19, %s142_s0 }
  0x10   :  { %81 = vst.msk [vmem:[%s215_s1] sm:$0xff] %vm80_vm2, %v79_v20  }
  0x12   :  { %v102_v23 = vld [vmem:[#allocation0 + $0x41] ss:$8 sm:$0xf]   ;;  %v83_v24 = vld [vmem:[#allocation0 + $0x40] ss:$8 sm:$0xf]  }
  0x13   :  { %v106_v25 = vsel %vm86_vm1, %v104_v21, %v102_v23  ;;  %v87_v26 = vsel %vm86_vm1, %v85_v22, %v83_v24 }
  0x14   :  { %139 = vst.msk [vmem:[%s215_s1 + $0x8] sm:$0x7f] %vm80_vm2, %v87_v26   ;;  %107 = vrot.lane.b32.xlu0 %v106_v25, %s142_s0 }
  0x81   :  { %v98_v27 = vpop.permute.xlu0 %97  }
  0x82   :  { %100 = vst.msk [vmem:[%s215_s1] sm:$0xff] %vm99_vm3, %v98_v27  }
  0x86   :  { %v108_v28 = vpop.permute.xlu0 %107  }
  0x87   :  { %140 = vst.msk [vmem:[%s215_s1 + $0x8] sm:$0x7f] %vm99_vm3, %v108_v28  }

// kernel: squeeze.2
= control target key start
LH: loop header
LB: loop body
LE: loop exit
PB: predicated region body
PF: predicated region fallthrough
CT: control target
= control target key end

     0   :  { %vm78_vm0 = vcmask 1047556   ;;  %vm86_vm1 = vcmask 1046532   ;;  %vm80_vm2 = vcmask 64512   ;;  %vm99_vm3 = vcmask 130112   ;;  %s214_s0 = inlined_call_operand.vmem [shape: f32[2,8,1,5,3], index: 0, kind: input, shape index: {}]   ;;  %s215_s1 = inlined_call_operand.vmem [shape: f32[16,15], index: 1, kind: output, shape index: {}]  }
   0x1   :  { %v132_v0 = vld [vmem:[%s214_s0 + $0xe] sm:$0x3]  ;;  %v133_v1 = vld [vmem:[%s214_s0 + $0xc] sm:$0x3]  ;;  %v134_v2 = vld [vmem:[%s214_s0 + $0xa] sm:$0x3] }
   0x2   :  { %44 = vst [vmem:[#allocation0 + $0x38] sm:$0x3] %v132_v0  ;;  %49 = vst [vmem:[#allocation0 + $0x30] sm:$0x3] %v133_v1  ;;  %v135_v3 = vld [vmem:[%s214_s0 + $0x8] sm:$0x3] }
   0x3   :  { %54 = vst [vmem:[#allocation0 + $0x28] sm:$0x3] %v134_v2  ;;  %v136_v4 = vld [vmem:[%s214_s0 + $0x6] sm:$0x3]  ;;  %v137_v5 = vld [vmem:[%s214_s0 + $0x4] sm:$0x3] }
   0x4   :  { %59 = vst [vmem:[#allocation0 + $0x20] sm:$0x3] %v135_v3  ;;  %64 = vst [vmem:[#allocation0 + $0x18] sm:$0x3] %v136_v4  ;;  %v138_v6 = vld [vmem:[%s214_s0 + $0x2] sm:$0x3] }
   0x5   :  { %69 = vst [vmem:[#allocation0 + $0x10] sm:$0x3] %v137_v5  ;;  %v74_v7 = vld [vmem:[%s214_s0] sm:$0x3]  ;;  %73 = vst [vmem:[#allocation0 + $0x8] sm:$0x3] %v138_v6 }
   0x6   :  { %75 = vst [vmem:[#allocation0] sm:$0x3] %v74_v7  ;;  %v125_v8 = vld [vmem:[%s214_s0 + $0x1c] sm:$0x3]  ;;  %v126_v9 = vld [vmem:[%s214_s0 + $0x1a] sm:$0x3] }
   0x7   :  { %v127_v10 = vld [vmem:[%s214_s0 + $0x18] sm:$0x3]  ;;  %9 = vst [vmem:[#allocation0 + $0x70] sm:$0x3] %v125_v8  ;;  %14 = vst [vmem:[#allocation0 + $0x68] sm:$0x3] %v126_v9 }
   0x8   :  { %19 = vst [vmem:[#allocation0 + $0x60] sm:$0x3] %v127_v10  ;;  %v128_v11 = vld [vmem:[%s214_s0 + $0x16] sm:$0x3]  ;;  %v129_v12 = vld [vmem:[%s214_s0 + $0x14] sm:$0x3] }
   0x9   :  { %v130_v13 = vld [vmem:[%s214_s0 + $0x12] sm:$0x3]  ;;  %24 = vst [vmem:[#allocation0 + $0x58] sm:$0x3] %v128_v11  ;;  %29 = vst [vmem:[#allocation0 + $0x50] sm:$0x3] %v129_v12 }
   0xa   :  { %34 = vst [vmem:[#allocation0 + $0x48] sm:$0x3] %v130_v13  ;;  %v131_v14 = vld [vmem:[%s214_s0 + $0x10] sm:$0x3]  ;;  %s142_s0 = smov 8  }
   0xb   :  { %39 = vst [vmem:[#allocation0 + $0x40] sm:$0x3] %v131_v14  ;;  %v94_v15 = vld [vmem:[#allocation0 + $0x1] ss:$8 sm:$0xf0]  }
   0xc   :  { %v77_v16 = vld [vmem:[#allocation0] ss:$8 sm:$0xf0]  }
   0xd   :  { %v76_v17 = vld [vmem:[#allocation0] ss:$8 sm:$0xf]   ;;  %v92_v18 = vld [vmem:[#allocation0 + $0x1] ss:$8 sm:$0xf]  }
   0xe   :  { %v96_v19 = vsel %vm78_vm0, %v94_v15, %v92_v18  ;;  %v79_v20 = vsel %vm78_vm0, %v77_v16, %v76_v17 }
   0xf   :  { %v104_v21 = vld [vmem:[#allocation0 + $0x41] ss:$8 sm:$0x70]   ;;  %v85_v22 = vld [vmem:[#allocation0 + $0x40] ss:$8 sm:$0x70]   ;;  %97 = vrot.lane.b32.xlu0 %v96_v19, %s142_s0 }
  0x10   :  { %81 = vst.msk [vmem:[%s215_s1] sm:$0xff] %vm80_vm2, %v79_v20  }
  0x12   :  { %v102_v23 = vld [vmem:[#allocation0 + $0x41] ss:$8 sm:$0xf]   ;;  %v83_v24 = vld [vmem:[#allocation0 + $0x40] ss:$8 sm:$0xf]  }
  0x13   :  { %v106_v25 = vsel %vm86_vm1, %v104_v21, %v102_v23  ;;  %v87_v26 = vsel %vm86_vm1, %v85_v22, %v83_v24 }
  0x14   :  { %139 = vst.msk [vmem:[%s215_s1 + $0x8] sm:$0x7f] %vm80_vm2, %v87_v26   ;;  %107 = vrot.lane.b32.xlu0 %v106_v25, %s142_s0 }
  0x81   :  { %v98_v27 = vpop.permute.xlu0 %97  }
  0x82   :  { %100 = vst.msk [vmem:[%s215_s1] sm:$0xff] %vm99_vm3, %v98_v27  }
  0x86   :  { %v108_v28 = vpop.permute.xlu0 %107  }
  0x87   :  { %140 = vst.msk [vmem:[%s215_s1 + $0x8] sm:$0x7f] %vm99_vm3, %v108_v28  }

</bundles_post_ra>
